<compile_context>
chip_gen: v7x
topology: tpu7x:2x2x1
jax: 0.10.0
libtpu: 0.0.40
codegen_flags: <defaults>
</compile_context>

<pallas_src>
import functools

import jax
import jax.numpy as jnp
from jax.experimental import pallas as pl
from jax.experimental.pallas import tpu as pltpu


# --------------------------------------------------------------------------
# Kernel bodies
# --------------------------------------------------------------------------
def _build_p(xb, freqs, fold, in_dim):
    """Frequency expansion in folded output lane order.

    xb: (tile, fold*D) with lane layout [r, d].
    Returns (tile, fold*E*D) with p[:, r*ED + e*D + d] = freqs[e] * xb[:, r*D + d].
    Pure VALU scalar multiplies + static lane concats (XLU slots have slack at
    the HBM roofline).
    """
    rows = []
    for r in range(fold):
        xr = xb[:, r * in_dim:(r + 1) * in_dim]                 # (tile, D)
        rows.append(jnp.concatenate([xr * f for f in freqs], axis=-1))
    if len(rows) == 1:
        return rows[0]
    return jnp.concatenate(rows, axis=-1)                        # (tile, fold*ED)


def _store_out(out_ref, sp, cp, fold, ed):
    """Interleave sin/cos per folded row into the dense out block.

    out layout per folded row r: [sin (ED lanes), cos (ED lanes)].
    Static lane-slice stores into the 2*fold*ED-wide VMEM block; the HBM
    writeback DMA of the block itself is fully lane-dense.
    """
    for r in range(fold):
        base = r * 2 * ed
        out_ref[:, base:base + ed] = sp[:, r * ed:(r + 1) * ed].astype(out_ref.dtype)
        out_ref[:, base + ed:base + 2 * ed] = cp[:, r * ed:(r + 1) * ed].astype(out_ref.dtype)


def _pe_kernel_noscale(x_ref, out_ref, *, freqs, fold, in_dim):
    ed = len(freqs) * in_dim
    p = _build_p(x_ref[...], freqs, fold, in_dim)                # dense lanes
    _store_out(out_ref, jnp.sin(p), jnp.cos(p), fold, ed)


def _pe_kernel_bcast_scale(x_ref, scale_ref, out_ref, *, freqs, fold, in_dim):
    # scale_ref: (1, fold*ED), resident across the whole grid; sublane-broadcast.
    ed = len(freqs) * in_dim
    p = _build_p(x_ref[...], freqs, fold, in_dim)
    s = scale_ref[...]                                           # (1, fold*ED)
    _store_out(out_ref, s * jnp.sin(p), s * jnp.cos(p), fold, ed)


def _pe_kernel_row_scale(x_ref, scale_ref, out_ref, *, freqs, fold, in_dim):
    # scale_ref: (tile, fold*ED), streamed per row like x.
    ed = len(freqs) * in_dim
    p = _build_p(x_ref[...], freqs, fold, in_dim)
    s = scale_ref[...]
    _store_out(out_ref, s * jnp.sin(p), s * jnp.cos(p), fold, ed)


# --------------------------------------------------------------------------
# Wrapper
# --------------------------------------------------------------------------
def _pick_fold(batch):
    for r in (16, 8, 4, 2):
        if batch % r == 0:
            return r
    return 1


def _pick_tile(bf, target_f):
    """Choose folded-rows per grid step: >=2 steps when possible (v7x megacore
    + pipelining), each step a multiple of 8 sublanes, close to target."""
    if bf <= 8:
        return bf, 1                                   # single block == full dim
    nsteps = max(2, pl.cdiv(bf, max(8, target_f)))
    tile = pl.cdiv(bf, nsteps)
    tile = max(8, ((tile + 7) // 8) * 8)
    return tile, pl.cdiv(bf, tile)


def positional_encoding(x, embed_dim, scale=None, *, tile_rows=8192,
                        out_dtype=jnp.float32):
    """Pallas implementation of PositionalEncoding.forward.

    Args:
      x: float[batch, input_dim] (input_dim is typically 3)
      scale: None, float[1, E*input_dim] (shared / lowpass), or
             float[batch, E*input_dim]
      tile_rows: target original rows processed per grid step.
      out_dtype: jnp.float32 (default, torch-exact) or jnp.bfloat16 on v6e/v7x
                 to halve the dominant output HBM stream.

    Returns: out_dtype[batch, 2*E*input_dim]
    """
    x = jnp.asarray(x, jnp.float32)
    B, D = x.shape
    E = int(embed_dim)
    ED = E * D
    freqs = tuple(float(2.0 ** t) for t in range(E))

    fold = _pick_fold(B)
    BF = B // fold
    target_f = max(8, int(tile_rows) // fold)
    tile_f, nsteps = _pick_tile(BF, target_f)
    grid = (nsteps,)

    xf = x.reshape(BF, fold * D)                        # free row-major reshape
    out_shape = jax.ShapeDtypeStruct((BF, fold * 2 * ED), out_dtype)
    x_spec = pl.BlockSpec((tile_f, fold * D), lambda i: (i, 0))
    out_spec = pl.BlockSpec((tile_f, fold * 2 * ED), lambda i: (i, 0))
    cparams = pltpu.CompilerParams(
        dimension_semantics=("parallel",),
        vmem_limit_bytes=32 * 1024 * 1024,
    )
    out_bytes = B * 2 * ED * jnp.dtype(out_dtype).itemsize

    if scale is None:
        cost = pl.CostEstimate(flops=B * ED, transcendentals=2 * B * ED,
                               bytes_accessed=x.size * 4 + out_bytes)
        out = pl.pallas_call(
            functools.partial(_pe_kernel_noscale, freqs=freqs, fold=fold, in_dim=D),
            out_shape=out_shape,
            grid_spec=pltpu.PrefetchScalarGridSpec(
                num_scalar_prefetch=0, grid=grid,
                in_specs=[x_spec], out_specs=out_spec),
            compiler_params=cparams, cost_estimate=cost,
        )(xf)
        return out.reshape(B, 2 * ED)

    scale = jnp.asarray(scale, jnp.float32)
    if scale.ndim == 1:
        scale = scale.reshape(1, -1)

    if scale.shape[0] == 1:
        # Shared scale: do NOT materialize a (B, ED) broadcast in HBM; pass a
        # tiny (1, fold*ED) block that stays resident and broadcasts in-kernel.
        sf = jnp.tile(scale.reshape(1, ED), (1, fold))
        s_spec = pl.BlockSpec((1, fold * ED), lambda i: (0, 0))
        kern = _pe_kernel_bcast_scale
        scale_bytes = sf.size * 4
    else:
        sf = jnp.broadcast_to(scale, (B, ED)).reshape(BF, fold * ED)
        s_spec = pl.BlockSpec((tile_f, fold * ED), lambda i: (i, 0))
        kern = _pe_kernel_row_scale
        scale_bytes = B * ED * 4

    cost = pl.CostEstimate(flops=3 * B * ED, transcendentals=2 * B * ED,
                           bytes_accessed=x.size * 4 + scale_bytes + out_bytes)
    out = pl.pallas_call(
        functools.partial(kern, freqs=freqs, fold=fold, in_dim=D),
        out_shape=out_shape,
        grid_spec=pltpu.PrefetchScalarGridSpec(
            num_scalar_prefetch=0, grid=grid,
            in_specs=[x_spec, s_spec], out_specs=out_spec),
        compiler_params=cparams, cost_estimate=cost,
    )(xf, sf)
    return out.reshape(B, 2 * ED)


# --------------------------------------------------------------------------
# Reference + tests
# --------------------------------------------------------------------------
def _reference(x, embed_dim, scale=None):
    B, D = x.shape
    freq = jnp.asarray([2.0 ** t for t in range(embed_dim)], dtype=jnp.float32)
    p = (freq[None, :, None] * x[:, None, :]).reshape(B, -1)      # (B, E*D)
    if scale is None:
        scale = jnp.ones_like(p)
    scale = jnp.broadcast_to(jnp.asarray(scale, jnp.float32), p.shape)
    return jnp.concatenate([scale * jnp.sin(p), scale * jnp.cos(p)], axis=1)


if __name__ == "__main__":
    key = jax.random.PRNGKey(0)
    k1, k2, k3 = jax.random.split(key, 3)

    batch, input_dim, embed_dim = 64, 3, 8
    x = jax.random.normal(k1, (batch, input_dim), dtype=jnp.float32)
    scale_rows = jax.random.uniform(k2, (batch, embed_dim * input_dim),
                                    dtype=jnp.float32)
    scale_shared = jax.random.uniform(k3, (1, embed_dim * input_dim),
                                      dtype=jnp.float32)

    # 1) Per-row scale, fold=16, single block.
    out = jax.block_until_ready(positional_encoding(x, embed_dim, scale_rows))
    ref = _reference(x, embed_dim, scale_rows)
    assert out.shape == (batch, 2 * embed_dim * input_dim)
    assert jnp.allclose(out, ref, atol=1e-5, rtol=1e-5), "row-scale mismatch"

    # 2) Shared (lowpass-style) scale: resident block, no HBM broadcast.
    out_s = jax.block_until_ready(positional_encoding(x, embed_dim, scale_shared))
    assert jnp.allclose(out_s, _reference(x, embed_dim, scale_shared),
                        atol=1e-5, rtol=1e-5), "shared-scale mismatch"

    # 3) scale=None fast path with batch not divisible by 16 (fold degrades to 8).
    x2 = x[:40]
    out2 = jax.block_until_ready(positional_encoding(x2, embed_dim))
    assert jnp.allclose(out2, _reference(x2, embed_dim),
                        atol=1e-5, rtol=1e-5), "no-scale mismatch"

    # 4) Multi-step grid (grid >= 2) with per-row scale.
    x3 = jax.random.normal(k1, (256, input_dim), dtype=jnp.float32)
    s3 = jax.random.uniform(k2, (256, embed_dim * input_dim), dtype=jnp.float32)
    out3 = jax.block_until_ready(
        positional_encoding(x3, embed_dim, s3, tile_rows=128))
    assert jnp.allclose(out3, _reference(x3, embed_dim, s3),
                        atol=1e-5, rtol=1e-5), "tiled mismatch"

    # 5) Ragged final grid block (boundary masking) with shared scale.
    x4 = jax.random.normal(k3, (656, input_dim), dtype=jnp.float32)
    out4 = jax.block_until_ready(
        positional_encoding(x4, embed_dim, scale_shared, tile_rows=256))
    assert jnp.allclose(out4, _reference(x4, embed_dim, scale_shared),
                        atol=1e-5, rtol=1e-5), "ragged mismatch"

    print("KERNEL_OK")
</pallas_src>

<mosaic_0001>
module attributes {stable_mosaic.version = 11 : i64} {
  func.func @_pe_kernel_row_scale(%arg0: i32, %arg1: memref<4x48xf32, #tpu.memory_space<vmem>>, %arg2: memref<4x384xf32, #tpu.memory_space<vmem>>, %arg3: memref<4x768xf32, #tpu.memory_space<vmem>>) attributes {dimension_semantics = [#tpu.dimension_semantics<parallel>], iteration_bounds = array<i64: 1>, scalar_prefetch = 0 : i64, scratch_operands = 0 : i64, tpu.core_type = #tpu.core_type<tc>, window_params = [{transform_indices = @transform_0, window_bounds = array<i64: 4, 48>}, {transform_indices = @transform_1, window_bounds = array<i64: 4, 384>}, {transform_indices = @transform_2, window_bounds = array<i64: 4, 768>}]} {
    %c0 = arith.constant 0 : index
    %c0_0 = arith.constant 0 : index
    %0 = vector.load %arg1[%c0, %c0_0] : memref<4x48xf32, #tpu.memory_space<vmem>>, vector<4x48xf32>
    %1 = vector.extract_strided_slice %0 {offsets = [0, 0], sizes = [4, 3], strides = [1, 1]} : vector<4x48xf32> to vector<4x3xf32>
    %cst = arith.constant 1.000000e+00 : f32
    %2 = vector.broadcast %cst : f32 to vector<4x3xf32>
    %3 = arith.mulf %1, %2 : vector<4x3xf32>
    %cst_1 = arith.constant 2.000000e+00 : f32
    %4 = vector.broadcast %cst_1 : f32 to vector<4x3xf32>
    %5 = arith.mulf %1, %4 : vector<4x3xf32>
    %cst_2 = arith.constant 4.000000e+00 : f32
    %6 = vector.broadcast %cst_2 : f32 to vector<4x3xf32>
    %7 = arith.mulf %1, %6 : vector<4x3xf32>
    %cst_3 = arith.constant 8.000000e+00 : f32
    %8 = vector.broadcast %cst_3 : f32 to vector<4x3xf32>
    %9 = arith.mulf %1, %8 : vector<4x3xf32>
    %cst_4 = arith.constant 1.600000e+01 : f32
    %10 = vector.broadcast %cst_4 : f32 to vector<4x3xf32>
    %11 = arith.mulf %1, %10 : vector<4x3xf32>
    %cst_5 = arith.constant 3.200000e+01 : f32
    %12 = vector.broadcast %cst_5 : f32 to vector<4x3xf32>
    %13 = arith.mulf %1, %12 : vector<4x3xf32>
    %cst_6 = arith.constant 6.400000e+01 : f32
    %14 = vector.broadcast %cst_6 : f32 to vector<4x3xf32>
    %15 = arith.mulf %1, %14 : vector<4x3xf32>
    %cst_7 = arith.constant 1.280000e+02 : f32
    %16 = vector.broadcast %cst_7 : f32 to vector<4x3xf32>
    %17 = arith.mulf %1, %16 : vector<4x3xf32>
    %18 = tpu.concatenate %3, %5, %7, %9, %11, %13, %15, %17 in 1 : vector<4x3xf32>, vector<4x3xf32>, vector<4x3xf32>, vector<4x3xf32>, vector<4x3xf32>, vector<4x3xf32>, vector<4x3xf32>, vector<4x3xf32> -> vector<4x24xf32>
    %19 = vector.extract_strided_slice %0 {offsets = [0, 3], sizes = [4, 3], strides = [1, 1]} : vector<4x48xf32> to vector<4x3xf32>
    %cst_8 = arith.constant 1.000000e+00 : f32
    %20 = vector.broadcast %cst_8 : f32 to vector<4x3xf32>
    %21 = arith.mulf %19, %20 : vector<4x3xf32>
    %cst_9 = arith.constant 2.000000e+00 : f32
    %22 = vector.broadcast %cst_9 : f32 to vector<4x3xf32>
    %23 = arith.mulf %19, %22 : vector<4x3xf32>
    %cst_10 = arith.constant 4.000000e+00 : f32
    %24 = vector.broadcast %cst_10 : f32 to vector<4x3xf32>
    %25 = arith.mulf %19, %24 : vector<4x3xf32>
    %cst_11 = arith.constant 8.000000e+00 : f32
    %26 = vector.broadcast %cst_11 : f32 to vector<4x3xf32>
    %27 = arith.mulf %19, %26 : vector<4x3xf32>
    %cst_12 = arith.constant 1.600000e+01 : f32
    %28 = vector.broadcast %cst_12 : f32 to vector<4x3xf32>
    %29 = arith.mulf %19, %28 : vector<4x3xf32>
    %cst_13 = arith.constant 3.200000e+01 : f32
    %30 = vector.broadcast %cst_13 : f32 to vector<4x3xf32>
    %31 = arith.mulf %19, %30 : vector<4x3xf32>
    %cst_14 = arith.constant 6.400000e+01 : f32
    %32 = vector.broadcast %cst_14 : f32 to vector<4x3xf32>
    %33 = arith.mulf %19, %32 : vector<4x3xf32>
    %cst_15 = arith.constant 1.280000e+02 : f32
    %34 = vector.broadcast %cst_15 : f32 to vector<4x3xf32>
    %35 = arith.mulf %19, %34 : vector<4x3xf32>
    %36 = tpu.concatenate %21, %23, %25, %27, %29, %31, %33, %35 in 1 : vector<4x3xf32>, vector<4x3xf32>, vector<4x3xf32>, vector<4x3xf32>, vector<4x3xf32>, vector<4x3xf32>, vector<4x3xf32>, vector<4x3xf32> -> vector<4x24xf32>
    %37 = vector.extract_strided_slice %0 {offsets = [0, 6], sizes = [4, 3], strides = [1, 1]} : vector<4x48xf32> to vector<4x3xf32>
    %cst_16 = arith.constant 1.000000e+00 : f32
    %38 = vector.broadcast %cst_16 : f32 to vector<4x3xf32>
    %39 = arith.mulf %37, %38 : vector<4x3xf32>
    %cst_17 = arith.constant 2.000000e+00 : f32
    %40 = vector.broadcast %cst_17 : f32 to vector<4x3xf32>
    %41 = arith.mulf %37, %40 : vector<4x3xf32>
    %cst_18 = arith.constant 4.000000e+00 : f32
    %42 = vector.broadcast %cst_18 : f32 to vector<4x3xf32>
    %43 = arith.mulf %37, %42 : vector<4x3xf32>
    %cst_19 = arith.constant 8.000000e+00 : f32
    %44 = vector.broadcast %cst_19 : f32 to vector<4x3xf32>
    %45 = arith.mulf %37, %44 : vector<4x3xf32>
    %cst_20 = arith.constant 1.600000e+01 : f32
    %46 = vector.broadcast %cst_20 : f32 to vector<4x3xf32>
    %47 = arith.mulf %37, %46 : vector<4x3xf32>
    %cst_21 = arith.constant 3.200000e+01 : f32
    %48 = vector.broadcast %cst_21 : f32 to vector<4x3xf32>
    %49 = arith.mulf %37, %48 : vector<4x3xf32>
    %cst_22 = arith.constant 6.400000e+01 : f32
    %50 = vector.broadcast %cst_22 : f32 to vector<4x3xf32>
    %51 = arith.mulf %37, %50 : vector<4x3xf32>
    %cst_23 = arith.constant 1.280000e+02 : f32
    %52 = vector.broadcast %cst_23 : f32 to vector<4x3xf32>
    %53 = arith.mulf %37, %52 : vector<4x3xf32>
    %54 = tpu.concatenate %39, %41, %43, %45, %47, %49, %51, %53 in 1 : vector<4x3xf32>, vector<4x3xf32>, vector<4x3xf32>, vector<4x3xf32>, vector<4x3xf32>, vector<4x3xf32>, vector<4x3xf32>, vector<4x3xf32> -> vector<4x24xf32>
    %55 = vector.extract_strided_slice %0 {offsets = [0, 9], sizes = [4, 3], strides = [1, 1]} : vector<4x48xf32> to vector<4x3xf32>
    %cst_24 = arith.constant 1.000000e+00 : f32
    %56 = vector.broadcast %cst_24 : f32 to vector<4x3xf32>
    %57 = arith.mulf %55, %56 : vector<4x3xf32>
    %cst_25 = arith.constant 2.000000e+00 : f32
    %58 = vector.broadcast %cst_25 : f32 to vector<4x3xf32>
    %59 = arith.mulf %55, %58 : vector<4x3xf32>
    %cst_26 = arith.constant 4.000000e+00 : f32
    %60 = vector.broadcast %cst_26 : f32 to vector<4x3xf32>
    %61 = arith.mulf %55, %60 : vector<4x3xf32>
    %cst_27 = arith.constant 8.000000e+00 : f32
    %62 = vector.broadcast %cst_27 : f32 to vector<4x3xf32>
    %63 = arith.mulf %55, %62 : vector<4x3xf32>
    %cst_28 = arith.constant 1.600000e+01 : f32
    %64 = vector.broadcast %cst_28 : f32 to vector<4x3xf32>
    %65 = arith.mulf %55, %64 : vector<4x3xf32>
    %cst_29 = arith.constant 3.200000e+01 : f32
    %66 = vector.broadcast %cst_29 : f32 to vector<4x3xf32>
    %67 = arith.mulf %55, %66 : vector<4x3xf32>
    %cst_30 = arith.constant 6.400000e+01 : f32
    %68 = vector.broadcast %cst_30 : f32 to vector<4x3xf32>
    %69 = arith.mulf %55, %68 : vector<4x3xf32>
    %cst_31 = arith.constant 1.280000e+02 : f32
    %70 = vector.broadcast %cst_31 : f32 to vector<4x3xf32>
    %71 = arith.mulf %55, %70 : vector<4x3xf32>
    %72 = tpu.concatenate %57, %59, %61, %63, %65, %67, %69, %71 in 1 : vector<4x3xf32>, vector<4x3xf32>, vector<4x3xf32>, vector<4x3xf32>, vector<4x3xf32>, vector<4x3xf32>, vector<4x3xf32>, vector<4x3xf32> -> vector<4x24xf32>
    %73 = vector.extract_strided_slice %0 {offsets = [0, 12], sizes = [4, 3], strides = [1, 1]} : vector<4x48xf32> to vector<4x3xf32>
    %cst_32 = arith.constant 1.000000e+00 : f32
    %74 = vector.broadcast %cst_32 : f32 to vector<4x3xf32>
    %75 = arith.mulf %73, %74 : vector<4x3xf32>
    %cst_33 = arith.constant 2.000000e+00 : f32
    %76 = vector.broadcast %cst_33 : f32 to vector<4x3xf32>
    %77 = arith.mulf %73, %76 : vector<4x3xf32>
    %cst_34 = arith.constant 4.000000e+00 : f32
    %78 = vector.broadcast %cst_34 : f32 to vector<4x3xf32>
    %79 = arith.mulf %73, %78 : vector<4x3xf32>
    %cst_35 = arith.constant 8.000000e+00 : f32
    %80 = vector.broadcast %cst_35 : f32 to vector<4x3xf32>
    %81 = arith.mulf %73, %80 : vector<4x3xf32>
    %cst_36 = arith.constant 1.600000e+01 : f32
    %82 = vector.broadcast %cst_36 : f32 to vector<4x3xf32>
    %83 = arith.mulf %73, %82 : vector<4x3xf32>
    %cst_37 = arith.constant 3.200000e+01 : f32
    %84 = vector.broadcast %cst_37 : f32 to vector<4x3xf32>
    %85 = arith.mulf %73, %84 : vector<4x3xf32>
    %cst_38 = arith.constant 6.400000e+01 : f32
    %86 = vector.broadcast %cst_38 : f32 to vector<4x3xf32>
    %87 = arith.mulf %73, %86 : vector<4x3xf32>
    %cst_39 = arith.constant 1.280000e+02 : f32
    %88 = vector.broadcast %cst_39 : f32 to vector<4x3xf32>
    %89 = arith.mulf %73, %88 : vector<4x3xf32>
    %90 = tpu.concatenate %75, %77, %79, %81, %83, %85, %87, %89 in 1 : vector<4x3xf32>, vector<4x3xf32>, vector<4x3xf32>, vector<4x3xf32>, vector<4x3xf32>, vector<4x3xf32>, vector<4x3xf32>, vector<4x3xf32> -> vector<4x24xf32>
    %91 = vector.extract_strided_slice %0 {offsets = [0, 15], sizes = [4, 3], strides = [1, 1]} : vector<4x48xf32> to vector<4x3xf32>
    %cst_40 = arith.constant 1.000000e+00 : f32
    %92 = vector.broadcast %cst_40 : f32 to vector<4x3xf32>
    %93 = arith.mulf %91, %92 : vector<4x3xf32>
    %cst_41 = arith.constant 2.000000e+00 : f32
    %94 = vector.broadcast %cst_41 : f32 to vector<4x3xf32>
    %95 = arith.mulf %91, %94 : vector<4x3xf32>
    %cst_42 = arith.constant 4.000000e+00 : f32
    %96 = vector.broadcast %cst_42 : f32 to vector<4x3xf32>
    %97 = arith.mulf %91, %96 : vector<4x3xf32>
    %cst_43 = arith.constant 8.000000e+00 : f32
    %98 = vector.broadcast %cst_43 : f32 to vector<4x3xf32>
    %99 = arith.mulf %91, %98 : vector<4x3xf32>
    %cst_44 = arith.constant 1.600000e+01 : f32
    %100 = vector.broadcast %cst_44 : f32 to vector<4x3xf32>
    %101 = arith.mulf %91, %100 : vector<4x3xf32>
    %cst_45 = arith.constant 3.200000e+01 : f32
    %102 = vector.broadcast %cst_45 : f32 to vector<4x3xf32>
    %103 = arith.mulf %91, %102 : vector<4x3xf32>
    %cst_46 = arith.constant 6.400000e+01 : f32
    %104 = vector.broadcast %cst_46 : f32 to vector<4x3xf32>
    %105 = arith.mulf %91, %104 : vector<4x3xf32>
    %cst_47 = arith.constant 1.280000e+02 : f32
    %106 = vector.broadcast %cst_47 : f32 to vector<4x3xf32>
    %107 = arith.mulf %91, %106 : vector<4x3xf32>
    %108 = tpu.concatenate %93, %95, %97, %99, %101, %103, %105, %107 in 1 : vector<4x3xf32>, vector<4x3xf32>, vector<4x3xf32>, vector<4x3xf32>, vector<4x3xf32>, vector<4x3xf32>, vector<4x3xf32>, vector<4x3xf32> -> vector<4x24xf32>
    %109 = vector.extract_strided_slice %0 {offsets = [0, 18], sizes = [4, 3], strides = [1, 1]} : vector<4x48xf32> to vector<4x3xf32>
    %cst_48 = arith.constant 1.000000e+00 : f32
    %110 = vector.broadcast %cst_48 : f32 to vector<4x3xf32>
    %111 = arith.mulf %109, %110 : vector<4x3xf32>
    %cst_49 = arith.constant 2.000000e+00 : f32
    %112 = vector.broadcast %cst_49 : f32 to vector<4x3xf32>
    %113 = arith.mulf %109, %112 : vector<4x3xf32>
    %cst_50 = arith.constant 4.000000e+00 : f32
    %114 = vector.broadcast %cst_50 : f32 to vector<4x3xf32>
    %115 = arith.mulf %109, %114 : vector<4x3xf32>
    %cst_51 = arith.constant 8.000000e+00 : f32
    %116 = vector.broadcast %cst_51 : f32 to vector<4x3xf32>
    %117 = arith.mulf %109, %116 : vector<4x3xf32>
    %cst_52 = arith.constant 1.600000e+01 : f32
    %118 = vector.broadcast %cst_52 : f32 to vector<4x3xf32>
    %119 = arith.mulf %109, %118 : vector<4x3xf32>
    %cst_53 = arith.constant 3.200000e+01 : f32
    %120 = vector.broadcast %cst_53 : f32 to vector<4x3xf32>
    %121 = arith.mulf %109, %120 : vector<4x3xf32>
    %cst_54 = arith.constant 6.400000e+01 : f32
    %122 = vector.broadcast %cst_54 : f32 to vector<4x3xf32>
    %123 = arith.mulf %109, %122 : vector<4x3xf32>
    %cst_55 = arith.constant 1.280000e+02 : f32
    %124 = vector.broadcast %cst_55 : f32 to vector<4x3xf32>
    %125 = arith.mulf %109, %124 : vector<4x3xf32>
    %126 = tpu.concatenate %111, %113, %115, %117, %119, %121, %123, %125 in 1 : vector<4x3xf32>, vector<4x3xf32>, vector<4x3xf32>, vector<4x3xf32>, vector<4x3xf32>, vector<4x3xf32>, vector<4x3xf32>, vector<4x3xf32> -> vector<4x24xf32>
    %127 = vector.extract_strided_slice %0 {offsets = [0, 21], sizes = [4, 3], strides = [1, 1]} : vector<4x48xf32> to vector<4x3xf32>
    %cst_56 = arith.constant 1.000000e+00 : f32
    %128 = vector.broadcast %cst_56 : f32 to vector<4x3xf32>
    %129 = arith.mulf %127, %128 : vector<4x3xf32>
    %cst_57 = arith.constant 2.000000e+00 : f32
    %130 = vector.broadcast %cst_57 : f32 to vector<4x3xf32>
    %131 = arith.mulf %127, %130 : vector<4x3xf32>
    %cst_58 = arith.constant 4.000000e+00 : f32
    %132 = vector.broadcast %cst_58 : f32 to vector<4x3xf32>
    %133 = arith.mulf %127, %132 : vector<4x3xf32>
    %cst_59 = arith.constant 8.000000e+00 : f32
    %134 = vector.broadcast %cst_59 : f32 to vector<4x3xf32>
    %135 = arith.mulf %127, %134 : vector<4x3xf32>
    %cst_60 = arith.constant 1.600000e+01 : f32
    %136 = vector.broadcast %cst_60 : f32 to vector<4x3xf32>
    %137 = arith.mulf %127, %136 : vector<4x3xf32>
    %cst_61 = arith.constant 3.200000e+01 : f32
    %138 = vector.broadcast %cst_61 : f32 to vector<4x3xf32>
    %139 = arith.mulf %127, %138 : vector<4x3xf32>
    %cst_62 = arith.constant 6.400000e+01 : f32
    %140 = vector.broadcast %cst_62 : f32 to vector<4x3xf32>
    %141 = arith.mulf %127, %140 : vector<4x3xf32>
    %cst_63 = arith.constant 1.280000e+02 : f32
    %142 = vector.broadcast %cst_63 : f32 to vector<4x3xf32>
    %143 = arith.mulf %127, %142 : vector<4x3xf32>
    %144 = tpu.concatenate %129, %131, %133, %135, %137, %139, %141, %143 in 1 : vector<4x3xf32>, vector<4x3xf32>, vector<4x3xf32>, vector<4x3xf32>, vector<4x3xf32>, vector<4x3xf32>, vector<4x3xf32>, vector<4x3xf32> -> vector<4x24xf32>
    %145 = vector.extract_strided_slice %0 {offsets = [0, 24], sizes = [4, 3], strides = [1, 1]} : vector<4x48xf32> to vector<4x3xf32>
    %cst_64 = arith.constant 1.000000e+00 : f32
    %146 = vector.broadcast %cst_64 : f32 to vector<4x3xf32>
    %147 = arith.mulf %145, %146 : vector<4x3xf32>
    %cst_65 = arith.constant 2.000000e+00 : f32
    %148 = vector.broadcast %cst_65 : f32 to vector<4x3xf32>
    %149 = arith.mulf %145, %148 : vector<4x3xf32>
    %cst_66 = arith.constant 4.000000e+00 : f32
    %150 = vector.broadcast %cst_66 : f32 to vector<4x3xf32>
    %151 = arith.mulf %145, %150 : vector<4x3xf32>
    %cst_67 = arith.constant 8.000000e+00 : f32
    %152 = vector.broadcast %cst_67 : f32 to vector<4x3xf32>
    %153 = arith.mulf %145, %152 : vector<4x3xf32>
    %cst_68 = arith.constant 1.600000e+01 : f32
    %154 = vector.broadcast %cst_68 : f32 to vector<4x3xf32>
    %155 = arith.mulf %145, %154 : vector<4x3xf32>
    %cst_69 = arith.constant 3.200000e+01 : f32
    %156 = vector.broadcast %cst_69 : f32 to vector<4x3xf32>
    %157 = arith.mulf %145, %156 : vector<4x3xf32>
    %cst_70 = arith.constant 6.400000e+01 : f32
    %158 = vector.broadcast %cst_70 : f32 to vector<4x3xf32>
    %159 = arith.mulf %145, %158 : vector<4x3xf32>
    %cst_71 = arith.constant 1.280000e+02 : f32
    %160 = vector.broadcast %cst_71 : f32 to vector<4x3xf32>
    %161 = arith.mulf %145, %160 : vector<4x3xf32>
    %162 = tpu.concatenate %147, %149, %151, %153, %155, %157, %159, %161 in 1 : vector<4x3xf32>, vector<4x3xf32>, vector<4x3xf32>, vector<4x3xf32>, vector<4x3xf32>, vector<4x3xf32>, vector<4x3xf32>, vector<4x3xf32> -> vector<4x24xf32>
    %163 = vector.extract_strided_slice %0 {offsets = [0, 27], sizes = [4, 3], strides = [1, 1]} : vector<4x48xf32> to vector<4x3xf32>
    %cst_72 = arith.constant 1.000000e+00 : f32
    %164 = vector.broadcast %cst_72 : f32 to vector<4x3xf32>
    %165 = arith.mulf %163, %164 : vector<4x3xf32>
    %cst_73 = arith.constant 2.000000e+00 : f32
    %166 = vector.broadcast %cst_73 : f32 to vector<4x3xf32>
    %167 = arith.mulf %163, %166 : vector<4x3xf32>
    %cst_74 = arith.constant 4.000000e+00 : f32
    %168 = vector.broadcast %cst_74 : f32 to vector<4x3xf32>
    %169 = arith.mulf %163, %168 : vector<4x3xf32>
    %cst_75 = arith.constant 8.000000e+00 : f32
    %170 = vector.broadcast %cst_75 : f32 to vector<4x3xf32>
    %171 = arith.mulf %163, %170 : vector<4x3xf32>
    %cst_76 = arith.constant 1.600000e+01 : f32
    %172 = vector.broadcast %cst_76 : f32 to vector<4x3xf32>
    %173 = arith.mulf %163, %172 : vector<4x3xf32>
    %cst_77 = arith.constant 3.200000e+01 : f32
    %174 = vector.broadcast %cst_77 : f32 to vector<4x3xf32>
    %175 = arith.mulf %163, %174 : vector<4x3xf32>
    %cst_78 = arith.constant 6.400000e+01 : f32
    %176 = vector.broadcast %cst_78 : f32 to vector<4x3xf32>
    %177 = arith.mulf %163, %176 : vector<4x3xf32>
    %cst_79 = arith.constant 1.280000e+02 : f32
    %178 = vector.broadcast %cst_79 : f32 to vector<4x3xf32>
    %179 = arith.mulf %163, %178 : vector<4x3xf32>
    %180 = tpu.concatenate %165, %167, %169, %171, %173, %175, %177, %179 in 1 : vector<4x3xf32>, vector<4x3xf32>, vector<4x3xf32>, vector<4x3xf32>, vector<4x3xf32>, vector<4x3xf32>, vector<4x3xf32>, vector<4x3xf32> -> vector<4x24xf32>
    %181 = vector.extract_strided_slice %0 {offsets = [0, 30], sizes = [4, 3], strides = [1, 1]} : vector<4x48xf32> to vector<4x3xf32>
    %cst_80 = arith.constant 1.000000e+00 : f32
    %182 = vector.broadcast %cst_80 : f32 to vector<4x3xf32>
    %183 = arith.mulf %181, %182 : vector<4x3xf32>
    %cst_81 = arith.constant 2.000000e+00 : f32
    %184 = vector.broadcast %cst_81 : f32 to vector<4x3xf32>
    %185 = arith.mulf %181, %184 : vector<4x3xf32>
    %cst_82 = arith.constant 4.000000e+00 : f32
    %186 = vector.broadcast %cst_82 : f32 to vector<4x3xf32>
    %187 = arith.mulf %181, %186 : vector<4x3xf32>
    %cst_83 = arith.constant 8.000000e+00 : f32
    %188 = vector.broadcast %cst_83 : f32 to vector<4x3xf32>
    %189 = arith.mulf %181, %188 : vector<4x3xf32>
    %cst_84 = arith.constant 1.600000e+01 : f32
    %190 = vector.broadcast %cst_84 : f32 to vector<4x3xf32>
    %191 = arith.mulf %181, %190 : vector<4x3xf32>
    %cst_85 = arith.constant 3.200000e+01 : f32
    %192 = vector.broadcast %cst_85 : f32 to vector<4x3xf32>
    %193 = arith.mulf %181, %192 : vector<4x3xf32>
    %cst_86 = arith.constant 6.400000e+01 : f32
    %194 = vector.broadcast %cst_86 : f32 to vector<4x3xf32>
    %195 = arith.mulf %181, %194 : vector<4x3xf32>
    %cst_87 = arith.constant 1.280000e+02 : f32
    %196 = vector.broadcast %cst_87 : f32 to vector<4x3xf32>
    %197 = arith.mulf %181, %196 : vector<4x3xf32>
    %198 = tpu.concatenate %183, %185, %187, %189, %191, %193, %195, %197 in 1 : vector<4x3xf32>, vector<4x3xf32>, vector<4x3xf32>, vector<4x3xf32>, vector<4x3xf32>, vector<4x3xf32>, vector<4x3xf32>, vector<4x3xf32> -> vector<4x24xf32>
    %199 = vector.extract_strided_slice %0 {offsets = [0, 33], sizes = [4, 3], strides = [1, 1]} : vector<4x48xf32> to vector<4x3xf32>
    %cst_88 = arith.constant 1.000000e+00 : f32
    %200 = vector.broadcast %cst_88 : f32 to vector<4x3xf32>
    %201 = arith.mulf %199, %200 : vector<4x3xf32>
    %cst_89 = arith.constant 2.000000e+00 : f32
    %202 = vector.broadcast %cst_89 : f32 to vector<4x3xf32>
    %203 = arith.mulf %199, %202 : vector<4x3xf32>
    %cst_90 = arith.constant 4.000000e+00 : f32
    %204 = vector.broadcast %cst_90 : f32 to vector<4x3xf32>
    %205 = arith.mulf %199, %204 : vector<4x3xf32>
    %cst_91 = arith.constant 8.000000e+00 : f32
    %206 = vector.broadcast %cst_91 : f32 to vector<4x3xf32>
    %207 = arith.mulf %199, %206 : vector<4x3xf32>
    %cst_92 = arith.constant 1.600000e+01 : f32
    %208 = vector.broadcast %cst_92 : f32 to vector<4x3xf32>
    %209 = arith.mulf %199, %208 : vector<4x3xf32>
    %cst_93 = arith.constant 3.200000e+01 : f32
    %210 = vector.broadcast %cst_93 : f32 to vector<4x3xf32>
    %211 = arith.mulf %199, %210 : vector<4x3xf32>
    %cst_94 = arith.constant 6.400000e+01 : f32
    %212 = vector.broadcast %cst_94 : f32 to vector<4x3xf32>
    %213 = arith.mulf %199, %212 : vector<4x3xf32>
    %cst_95 = arith.constant 1.280000e+02 : f32
    %214 = vector.broadcast %cst_95 : f32 to vector<4x3xf32>
    %215 = arith.mulf %199, %214 : vector<4x3xf32>
    %216 = tpu.concatenate %201, %203, %205, %207, %209, %211, %213, %215 in 1 : vector<4x3xf32>, vector<4x3xf32>, vector<4x3xf32>, vector<4x3xf32>, vector<4x3xf32>, vector<4x3xf32>, vector<4x3xf32>, vector<4x3xf32> -> vector<4x24xf32>
    %217 = vector.extract_strided_slice %0 {offsets = [0, 36], sizes = [4, 3], strides = [1, 1]} : vector<4x48xf32> to vector<4x3xf32>
    %cst_96 = arith.constant 1.000000e+00 : f32
    %218 = vector.broadcast %cst_96 : f32 to vector<4x3xf32>
    %219 = arith.mulf %217, %218 : vector<4x3xf32>
    %cst_97 = arith.constant 2.000000e+00 : f32
    %220 = vector.broadcast %cst_97 : f32 to vector<4x3xf32>
    %221 = arith.mulf %217, %220 : vector<4x3xf32>
    %cst_98 = arith.constant 4.000000e+00 : f32
    %222 = vector.broadcast %cst_98 : f32 to vector<4x3xf32>
    %223 = arith.mulf %217, %222 : vector<4x3xf32>
    %cst_99 = arith.constant 8.000000e+00 : f32
    %224 = vector.broadcast %cst_99 : f32 to vector<4x3xf32>
    %225 = arith.mulf %217, %224 : vector<4x3xf32>
    %cst_100 = arith.constant 1.600000e+01 : f32
    %226 = vector.broadcast %cst_100 : f32 to vector<4x3xf32>
    %227 = arith.mulf %217, %226 : vector<4x3xf32>
    %cst_101 = arith.constant 3.200000e+01 : f32
    %228 = vector.broadcast %cst_101 : f32 to vector<4x3xf32>
    %229 = arith.mulf %217, %228 : vector<4x3xf32>
    %cst_102 = arith.constant 6.400000e+01 : f32
    %230 = vector.broadcast %cst_102 : f32 to vector<4x3xf32>
    %231 = arith.mulf %217, %230 : vector<4x3xf32>
    %cst_103 = arith.constant 1.280000e+02 : f32
    %232 = vector.broadcast %cst_103 : f32 to vector<4x3xf32>
    %233 = arith.mulf %217, %232 : vector<4x3xf32>
    %234 = tpu.concatenate %219, %221, %223, %225, %227, %229, %231, %233 in 1 : vector<4x3xf32>, vector<4x3xf32>, vector<4x3xf32>, vector<4x3xf32>, vector<4x3xf32>, vector<4x3xf32>, vector<4x3xf32>, vector<4x3xf32> -> vector<4x24xf32>
    %235 = vector.extract_strided_slice %0 {offsets = [0, 39], sizes = [4, 3], strides = [1, 1]} : vector<4x48xf32> to vector<4x3xf32>
    %cst_104 = arith.constant 1.000000e+00 : f32
    %236 = vector.broadcast %cst_104 : f32 to vector<4x3xf32>
    %237 = arith.mulf %235, %236 : vector<4x3xf32>
    %cst_105 = arith.constant 2.000000e+00 : f32
    %238 = vector.broadcast %cst_105 : f32 to vector<4x3xf32>
    %239 = arith.mulf %235, %238 : vector<4x3xf32>
    %cst_106 = arith.constant 4.000000e+00 : f32
    %240 = vector.broadcast %cst_106 : f32 to vector<4x3xf32>
    %241 = arith.mulf %235, %240 : vector<4x3xf32>
    %cst_107 = arith.constant 8.000000e+00 : f32
    %242 = vector.broadcast %cst_107 : f32 to vector<4x3xf32>
    %243 = arith.mulf %235, %242 : vector<4x3xf32>
    %cst_108 = arith.constant 1.600000e+01 : f32
    %244 = vector.broadcast %cst_108 : f32 to vector<4x3xf32>
    %245 = arith.mulf %235, %244 : vector<4x3xf32>
    %cst_109 = arith.constant 3.200000e+01 : f32
    %246 = vector.broadcast %cst_109 : f32 to vector<4x3xf32>
    %247 = arith.mulf %235, %246 : vector<4x3xf32>
    %cst_110 = arith.constant 6.400000e+01 : f32
    %248 = vector.broadcast %cst_110 : f32 to vector<4x3xf32>
    %249 = arith.mulf %235, %248 : vector<4x3xf32>
    %cst_111 = arith.constant 1.280000e+02 : f32
    %250 = vector.broadcast %cst_111 : f32 to vector<4x3xf32>
    %251 = arith.mulf %235, %250 : vector<4x3xf32>
    %252 = tpu.concatenate %237, %239, %241, %243, %245, %247, %249, %251 in 1 : vector<4x3xf32>, vector<4x3xf32>, vector<4x3xf32>, vector<4x3xf32>, vector<4x3xf32>, vector<4x3xf32>, vector<4x3xf32>, vector<4x3xf32> -> vector<4x24xf32>
    %253 = vector.extract_strided_slice %0 {offsets = [0, 42], sizes = [4, 3], strides = [1, 1]} : vector<4x48xf32> to vector<4x3xf32>
    %cst_112 = arith.constant 1.000000e+00 : f32
    %254 = vector.broadcast %cst_112 : f32 to vector<4x3xf32>
    %255 = arith.mulf %253, %254 : vector<4x3xf32>
    %cst_113 = arith.constant 2.000000e+00 : f32
    %256 = vector.broadcast %cst_113 : f32 to vector<4x3xf32>
    %257 = arith.mulf %253, %256 : vector<4x3xf32>
    %cst_114 = arith.constant 4.000000e+00 : f32
    %258 = vector.broadcast %cst_114 : f32 to vector<4x3xf32>
    %259 = arith.mulf %253, %258 : vector<4x3xf32>
    %cst_115 = arith.constant 8.000000e+00 : f32
    %260 = vector.broadcast %cst_115 : f32 to vector<4x3xf32>
    %261 = arith.mulf %253, %260 : vector<4x3xf32>
    %cst_116 = arith.constant 1.600000e+01 : f32
    %262 = vector.broadcast %cst_116 : f32 to vector<4x3xf32>
    %263 = arith.mulf %253, %262 : vector<4x3xf32>
    %cst_117 = arith.constant 3.200000e+01 : f32
    %264 = vector.broadcast %cst_117 : f32 to vector<4x3xf32>
    %265 = arith.mulf %253, %264 : vector<4x3xf32>
    %cst_118 = arith.constant 6.400000e+01 : f32
    %266 = vector.broadcast %cst_118 : f32 to vector<4x3xf32>
    %267 = arith.mulf %253, %266 : vector<4x3xf32>
    %cst_119 = arith.constant 1.280000e+02 : f32
    %268 = vector.broadcast %cst_119 : f32 to vector<4x3xf32>
    %269 = arith.mulf %253, %268 : vector<4x3xf32>
    %270 = tpu.concatenate %255, %257, %259, %261, %263, %265, %267, %269 in 1 : vector<4x3xf32>, vector<4x3xf32>, vector<4x3xf32>, vector<4x3xf32>, vector<4x3xf32>, vector<4x3xf32>, vector<4x3xf32>, vector<4x3xf32> -> vector<4x24xf32>
    %271 = vector.extract_strided_slice %0 {offsets = [0, 45], sizes = [4, 3], strides = [1, 1]} : vector<4x48xf32> to vector<4x3xf32>
    %cst_120 = arith.constant 1.000000e+00 : f32
    %272 = vector.broadcast %cst_120 : f32 to vector<4x3xf32>
    %273 = arith.mulf %271, %272 : vector<4x3xf32>
    %cst_121 = arith.constant 2.000000e+00 : f32
    %274 = vector.broadcast %cst_121 : f32 to vector<4x3xf32>
    %275 = arith.mulf %271, %274 : vector<4x3xf32>
    %cst_122 = arith.constant 4.000000e+00 : f32
    %276 = vector.broadcast %cst_122 : f32 to vector<4x3xf32>
    %277 = arith.mulf %271, %276 : vector<4x3xf32>
    %cst_123 = arith.constant 8.000000e+00 : f32
    %278 = vector.broadcast %cst_123 : f32 to vector<4x3xf32>
    %279 = arith.mulf %271, %278 : vector<4x3xf32>
    %cst_124 = arith.constant 1.600000e+01 : f32
    %280 = vector.broadcast %cst_124 : f32 to vector<4x3xf32>
    %281 = arith.mulf %271, %280 : vector<4x3xf32>
    %cst_125 = arith.constant 3.200000e+01 : f32
    %282 = vector.broadcast %cst_125 : f32 to vector<4x3xf32>
    %283 = arith.mulf %271, %282 : vector<4x3xf32>
    %cst_126 = arith.constant 6.400000e+01 : f32
    %284 = vector.broadcast %cst_126 : f32 to vector<4x3xf32>
    %285 = arith.mulf %271, %284 : vector<4x3xf32>
    %cst_127 = arith.constant 1.280000e+02 : f32
    %286 = vector.broadcast %cst_127 : f32 to vector<4x3xf32>
    %287 = arith.mulf %271, %286 : vector<4x3xf32>
    %288 = tpu.concatenate %273, %275, %277, %279, %281, %283, %285, %287 in 1 : vector<4x3xf32>, vector<4x3xf32>, vector<4x3xf32>, vector<4x3xf32>, vector<4x3xf32>, vector<4x3xf32>, vector<4x3xf32>, vector<4x3xf32> -> vector<4x24xf32>
    %289 = tpu.concatenate %18, %36, %54, %72, %90, %108, %126, %144, %162, %180, %198, %216, %234, %252, %270, %288 in 1 : vector<4x24xf32>, vector<4x24xf32>, vector<4x24xf32>, vector<4x24xf32>, vector<4x24xf32>, vector<4x24xf32>, vector<4x24xf32>, vector<4x24xf32>, vector<4x24xf32>, vector<4x24xf32>, vector<4x24xf32>, vector<4x24xf32>, vector<4x24xf32>, vector<4x24xf32>, vector<4x24xf32>, vector<4x24xf32> -> vector<4x384xf32>
    %c0_128 = arith.constant 0 : index
    %c0_129 = arith.constant 0 : index
    %290 = vector.load %arg2[%c0_128, %c0_129] : memref<4x384xf32, #tpu.memory_space<vmem>>, vector<4x384xf32>
    %291 = math.sin %289 : vector<4x384xf32>
    %292 = arith.mulf %290, %291 : vector<4x384xf32>
    %293 = math.cos %289 : vector<4x384xf32>
    %294 = arith.mulf %290, %293 : vector<4x384xf32>
    %295 = vector.extract_strided_slice %292 {offsets = [0, 0], sizes = [4, 24], strides = [1, 1]} : vector<4x384xf32> to vector<4x24xf32>
    %c0_130 = arith.constant 0 : index
    %c0_131 = arith.constant 0 : index
    %296 = vector.load %arg3[%c0_130, %c0_131] : memref<4x768xf32, #tpu.memory_space<vmem>>, vector<4x24xf32>
    tpu.vector_store %arg3[%c0_130, %c0_131], %295 {strides = array<i32>} : memref<4x768xf32, #tpu.memory_space<vmem>>, vector<4x24xf32>,
    %297 = vector.extract_strided_slice %294 {offsets = [0, 0], sizes = [4, 24], strides = [1, 1]} : vector<4x384xf32> to vector<4x24xf32>
    %c0_132 = arith.constant 0 : index
    %c24 = arith.constant 24 : index
    %298 = vector.load %arg3[%c0_132, %c24] : memref<4x768xf32, #tpu.memory_space<vmem>>, vector<4x24xf32>
    tpu.vector_store %arg3[%c0_132, %c24], %297 {strides = array<i32>} : memref<4x768xf32, #tpu.memory_space<vmem>>, vector<4x24xf32>,
    %299 = vector.extract_strided_slice %292 {offsets = [0, 24], sizes = [4, 24], strides = [1, 1]} : vector<4x384xf32> to vector<4x24xf32>
    %c0_133 = arith.constant 0 : index
    %c48 = arith.constant 48 : index
    %300 = vector.load %arg3[%c0_133, %c48] : memref<4x768xf32, #tpu.memory_space<vmem>>, vector<4x24xf32>
    tpu.vector_store %arg3[%c0_133, %c48], %299 {strides = array<i32>} : memref<4x768xf32, #tpu.memory_space<vmem>>, vector<4x24xf32>,
    %301 = vector.extract_strided_slice %294 {offsets = [0, 24], sizes = [4, 24], strides = [1, 1]} : vector<4x384xf32> to vector<4x24xf32>
    %c0_134 = arith.constant 0 : index
    %c72 = arith.constant 72 : index
    %302 = vector.load %arg3[%c0_134, %c72] : memref<4x768xf32, #tpu.memory_space<vmem>>, vector<4x24xf32>
    tpu.vector_store %arg3[%c0_134, %c72], %301 {strides = array<i32>} : memref<4x768xf32, #tpu.memory_space<vmem>>, vector<4x24xf32>,
    %303 = vector.extract_strided_slice %292 {offsets = [0, 48], sizes = [4, 24], strides = [1, 1]} : vector<4x384xf32> to vector<4x24xf32>
    %c0_135 = arith.constant 0 : index
    %c96 = arith.constant 96 : index
    %304 = vector.load %arg3[%c0_135, %c96] : memref<4x768xf32, #tpu.memory_space<vmem>>, vector<4x24xf32>
    tpu.vector_store %arg3[%c0_135, %c96], %303 {strides = array<i32>} : memref<4x768xf32, #tpu.memory_space<vmem>>, vector<4x24xf32>,
    %305 = vector.extract_strided_slice %294 {offsets = [0, 48], sizes = [4, 24], strides = [1, 1]} : vector<4x384xf32> to vector<4x24xf32>
    %c0_136 = arith.constant 0 : index
    %c120 = arith.constant 120 : index
    %306 = vector.load %arg3[%c0_136, %c120] : memref<4x768xf32, #tpu.memory_space<vmem>>, vector<4x24xf32>
    tpu.vector_store %arg3[%c0_136, %c120], %305 {strides = array<i32>} : memref<4x768xf32, #tpu.memory_space<vmem>>, vector<4x24xf32>,
    %307 = vector.extract_strided_slice %292 {offsets = [0, 72], sizes = [4, 24], strides = [1, 1]} : vector<4x384xf32> to vector<4x24xf32>
    %c0_137 = arith.constant 0 : index
    %c144 = arith.constant 144 : index
    %308 = vector.load %arg3[%c0_137, %c144] : memref<4x768xf32, #tpu.memory_space<vmem>>, vector<4x24xf32>
    tpu.vector_store %arg3[%c0_137, %c144], %307 {strides = array<i32>} : memref<4x768xf32, #tpu.memory_space<vmem>>, vector<4x24xf32>,
    %309 = vector.extract_strided_slice %294 {offsets = [0, 72], sizes = [4, 24], strides = [1, 1]} : vector<4x384xf32> to vector<4x24xf32>
    %c0_138 = arith.constant 0 : index
    %c168 = arith.constant 168 : index
    %310 = vector.load %arg3[%c0_138, %c168] : memref<4x768xf32, #tpu.memory_space<vmem>>, vector<4x24xf32>
    tpu.vector_store %arg3[%c0_138, %c168], %309 {strides = array<i32>} : memref<4x768xf32, #tpu.memory_space<vmem>>, vector<4x24xf32>,
    %311 = vector.extract_strided_slice %292 {offsets = [0, 96], sizes = [4, 24], strides = [1, 1]} : vector<4x384xf32> to vector<4x24xf32>
    %c0_139 = arith.constant 0 : index
    %c192 = arith.constant 192 : index
    %312 = vector.load %arg3[%c0_139, %c192] : memref<4x768xf32, #tpu.memory_space<vmem>>, vector<4x24xf32>
    tpu.vector_store %arg3[%c0_139, %c192], %311 {strides = array<i32>} : memref<4x768xf32, #tpu.memory_space<vmem>>, vector<4x24xf32>,
    %313 = vector.extract_strided_slice %294 {offsets = [0, 96], sizes = [4, 24], strides = [1, 1]} : vector<4x384xf32> to vector<4x24xf32>
    %c0_140 = arith.constant 0 : index
    %c216 = arith.constant 216 : index
    %314 = vector.load %arg3[%c0_140, %c216] : memref<4x768xf32, #tpu.memory_space<vmem>>, vector<4x24xf32>
    tpu.vector_store %arg3[%c0_140, %c216], %313 {strides = array<i32>} : memref<4x768xf32, #tpu.memory_space<vmem>>, vector<4x24xf32>,
    %315 = vector.extract_strided_slice %292 {offsets = [0, 120], sizes = [4, 24], strides = [1, 1]} : vector<4x384xf32> to vector<4x24xf32>
    %c0_141 = arith.constant 0 : index
    %c240 = arith.constant 240 : index
    %316 = vector.load %arg3[%c0_141, %c240] : memref<4x768xf32, #tpu.memory_space<vmem>>, vector<4x24xf32>
    tpu.vector_store %arg3[%c0_141, %c240], %315 {strides = array<i32>} : memref<4x768xf32, #tpu.memory_space<vmem>>, vector<4x24xf32>,
    %317 = vector.extract_strided_slice %294 {offsets = [0, 120], sizes = [4, 24], strides = [1, 1]} : vector<4x384xf32> to vector<4x24xf32>
    %c0_142 = arith.constant 0 : index
    %c264 = arith.constant 264 : index
    %318 = vector.load %arg3[%c0_142, %c264] : memref<4x768xf32, #tpu.memory_space<vmem>>, vector<4x24xf32>
    tpu.vector_store %arg3[%c0_142, %c264], %317 {strides = array<i32>} : memref<4x768xf32, #tpu.memory_space<vmem>>, vector<4x24xf32>,
    %319 = vector.extract_strided_slice %292 {offsets = [0, 144], sizes = [4, 24], strides = [1, 1]} : vector<4x384xf32> to vector<4x24xf32>
    %c0_143 = arith.constant 0 : index
    %c288 = arith.constant 288 : index
    %320 = vector.load %arg3[%c0_143, %c288] : memref<4x768xf32, #tpu.memory_space<vmem>>, vector<4x24xf32>
    tpu.vector_store %arg3[%c0_143, %c288], %319 {strides = array<i32>} : memref<4x768xf32, #tpu.memory_space<vmem>>, vector<4x24xf32>,
    %321 = vector.extract_strided_slice %294 {offsets = [0, 144], sizes = [4, 24], strides = [1, 1]} : vector<4x384xf32> to vector<4x24xf32>
    %c0_144 = arith.constant 0 : index
    %c312 = arith.constant 312 : index
    %322 = vector.load %arg3[%c0_144, %c312] : memref<4x768xf32, #tpu.memory_space<vmem>>, vector<4x24xf32>
    tpu.vector_store %arg3[%c0_144, %c312], %321 {strides = array<i32>} : memref<4x768xf32, #tpu.memory_space<vmem>>, vector<4x24xf32>,
    %323 = vector.extract_strided_slice %292 {offsets = [0, 168], sizes = [4, 24], strides = [1, 1]} : vector<4x384xf32> to vector<4x24xf32>
    %c0_145 = arith.constant 0 : index
    %c336 = arith.constant 336 : index
    %324 = vector.load %arg3[%c0_145, %c336] : memref<4x768xf32, #tpu.memory_space<vmem>>, vector<4x24xf32>
    tpu.vector_store %arg3[%c0_145, %c336], %323 {strides = array<i32>} : memref<4x768xf32, #tpu.memory_space<vmem>>, vector<4x24xf32>,
    %325 = vector.extract_strided_slice %294 {offsets = [0, 168], sizes = [4, 24], strides = [1, 1]} : vector<4x384xf32> to vector<4x24xf32>
    %c0_146 = arith.constant 0 : index
    %c360 = arith.constant 360 : index
    %326 = vector.load %arg3[%c0_146, %c360] : memref<4x768xf32, #tpu.memory_space<vmem>>, vector<4x24xf32>
    tpu.vector_store %arg3[%c0_146, %c360], %325 {strides = array<i32>} : memref<4x768xf32, #tpu.memory_space<vmem>>, vector<4x24xf32>,
    %327 = vector.extract_strided_slice %292 {offsets = [0, 192], sizes = [4, 24], strides = [1, 1]} : vector<4x384xf32> to vector<4x24xf32>
    %c0_147 = arith.constant 0 : index
    %c384 = arith.constant 384 : index
    %328 = vector.load %arg3[%c0_147, %c384] : memref<4x768xf32, #tpu.memory_space<vmem>>, vector<4x24xf32>
    tpu.vector_store %arg3[%c0_147, %c384], %327 {strides = array<i32>} : memref<4x768xf32, #tpu.memory_space<vmem>>, vector<4x24xf32>,
    %329 = vector.extract_strided_slice %294 {offsets = [0, 192], sizes = [4, 24], strides = [1, 1]} : vector<4x384xf32> to vector<4x24xf32>
    %c0_148 = arith.constant 0 : index
    %c408 = arith.constant 408 : index
    %330 = vector.load %arg3[%c0_148, %c408] : memref<4x768xf32, #tpu.memory_space<vmem>>, vector<4x24xf32>
    tpu.vector_store %arg3[%c0_148, %c408], %329 {strides = array<i32>} : memref<4x768xf32, #tpu.memory_space<vmem>>, vector<4x24xf32>,
    %331 = vector.extract_strided_slice %292 {offsets = [0, 216], sizes = [4, 24], strides = [1, 1]} : vector<4x384xf32> to vector<4x24xf32>
    %c0_149 = arith.constant 0 : index
    %c432 = arith.constant 432 : index
    %332 = vector.load %arg3[%c0_149, %c432] : memref<4x768xf32, #tpu.memory_space<vmem>>, vector<4x24xf32>
    tpu.vector_store %arg3[%c0_149, %c432], %331 {strides = array<i32>} : memref<4x768xf32, #tpu.memory_space<vmem>>, vector<4x24xf32>,
    %333 = vector.extract_strided_slice %294 {offsets = [0, 216], sizes = [4, 24], strides = [1, 1]} : vector<4x384xf32> to vector<4x24xf32>
    %c0_150 = arith.constant 0 : index
    %c456 = arith.constant 456 : index
    %334 = vector.load %arg3[%c0_150, %c456] : memref<4x768xf32, #tpu.memory_space<vmem>>, vector<4x24xf32>
    tpu.vector_store %arg3[%c0_150, %c456], %333 {strides = array<i32>} : memref<4x768xf32, #tpu.memory_space<vmem>>, vector<4x24xf32>,
    %335 = vector.extract_strided_slice %292 {offsets = [0, 240], sizes = [4, 24], strides = [1, 1]} : vector<4x384xf32> to vector<4x24xf32>
    %c0_151 = arith.constant 0 : index
    %c480 = arith.constant 480 : index
    %336 = vector.load %arg3[%c0_151, %c480] : memref<4x768xf32, #tpu.memory_space<vmem>>, vector<4x24xf32>
    tpu.vector_store %arg3[%c0_151, %c480], %335 {strides = array<i32>} : memref<4x768xf32, #tpu.memory_space<vmem>>, vector<4x24xf32>,
    %337 = vector.extract_strided_slice %294 {offsets = [0, 240], sizes = [4, 24], strides = [1, 1]} : vector<4x384xf32> to vector<4x24xf32>
    %c0_152 = arith.constant 0 : index
    %c504 = arith.constant 504 : index
    %338 = vector.load %arg3[%c0_152, %c504] : memref<4x768xf32, #tpu.memory_space<vmem>>, vector<4x24xf32>
    tpu.vector_store %arg3[%c0_152, %c504], %337 {strides = array<i32>} : memref<4x768xf32, #tpu.memory_space<vmem>>, vector<4x24xf32>,
    %339 = vector.extract_strided_slice %292 {offsets = [0, 264], sizes = [4, 24], strides = [1, 1]} : vector<4x384xf32> to vector<4x24xf32>
    %c0_153 = arith.constant 0 : index
    %c528 = arith.constant 528 : index
    %340 = vector.load %arg3[%c0_153, %c528] : memref<4x768xf32, #tpu.memory_space<vmem>>, vector<4x24xf32>
    tpu.vector_store %arg3[%c0_153, %c528], %339 {strides = array<i32>} : memref<4x768xf32, #tpu.memory_space<vmem>>, vector<4x24xf32>,
    %341 = vector.extract_strided_slice %294 {offsets = [0, 264], sizes = [4, 24], strides = [1, 1]} : vector<4x384xf32> to vector<4x24xf32>
    %c0_154 = arith.constant 0 : index
    %c552 = arith.constant 552 : index
    %342 = vector.load %arg3[%c0_154, %c552] : memref<4x768xf32, #tpu.memory_space<vmem>>, vector<4x24xf32>
    tpu.vector_store %arg3[%c0_154, %c552], %341 {strides = array<i32>} : memref<4x768xf32, #tpu.memory_space<vmem>>, vector<4x24xf32>,
    %343 = vector.extract_strided_slice %292 {offsets = [0, 288], sizes = [4, 24], strides = [1, 1]} : vector<4x384xf32> to vector<4x24xf32>
    %c0_155 = arith.constant 0 : index
    %c576 = arith.constant 576 : index
    %344 = vector.load %arg3[%c0_155, %c576] : memref<4x768xf32, #tpu.memory_space<vmem>>, vector<4x24xf32>
    tpu.vector_store %arg3[%c0_155, %c576], %343 {strides = array<i32>} : memref<4x768xf32, #tpu.memory_space<vmem>>, vector<4x24xf32>,
    %345 = vector.extract_strided_slice %294 {offsets = [0, 288], sizes = [4, 24], strides = [1, 1]} : vector<4x384xf32> to vector<4x24xf32>
    %c0_156 = arith.constant 0 : index
    %c600 = arith.constant 600 : index
    %346 = vector.load %arg3[%c0_156, %c600] : memref<4x768xf32, #tpu.memory_space<vmem>>, vector<4x24xf32>
    tpu.vector_store %arg3[%c0_156, %c600], %345 {strides = array<i32>} : memref<4x768xf32, #tpu.memory_space<vmem>>, vector<4x24xf32>,
    %347 = vector.extract_strided_slice %292 {offsets = [0, 312], sizes = [4, 24], strides = [1, 1]} : vector<4x384xf32> to vector<4x24xf32>
    %c0_157 = arith.constant 0 : index
    %c624 = arith.constant 624 : index
    %348 = vector.load %arg3[%c0_157, %c624] : memref<4x768xf32, #tpu.memory_space<vmem>>, vector<4x24xf32>
    tpu.vector_store %arg3[%c0_157, %c624], %347 {strides = array<i32>} : memref<4x768xf32, #tpu.memory_space<vmem>>, vector<4x24xf32>,
    %349 = vector.extract_strided_slice %294 {offsets = [0, 312], sizes = [4, 24], strides = [1, 1]} : vector<4x384xf32> to vector<4x24xf32>
    %c0_158 = arith.constant 0 : index
    %c648 = arith.constant 648 : index
    %350 = vector.load %arg3[%c0_158, %c648] : memref<4x768xf32, #tpu.memory_space<vmem>>, vector<4x24xf32>
    tpu.vector_store %arg3[%c0_158, %c648], %349 {strides = array<i32>} : memref<4x768xf32, #tpu.memory_space<vmem>>, vector<4x24xf32>,
    %351 = vector.extract_strided_slice %292 {offsets = [0, 336], sizes = [4, 24], strides = [1, 1]} : vector<4x384xf32> to vector<4x24xf32>
    %c0_159 = arith.constant 0 : index
    %c672 = arith.constant 672 : index
    %352 = vector.load %arg3[%c0_159, %c672] : memref<4x768xf32, #tpu.memory_space<vmem>>, vector<4x24xf32>
    tpu.vector_store %arg3[%c0_159, %c672], %351 {strides = array<i32>} : memref<4x768xf32, #tpu.memory_space<vmem>>, vector<4x24xf32>,
    %353 = vector.extract_strided_slice %294 {offsets = [0, 336], sizes = [4, 24], strides = [1, 1]} : vector<4x384xf32> to vector<4x24xf32>
    %c0_160 = arith.constant 0 : index
    %c696 = arith.constant 696 : index
    %354 = vector.load %arg3[%c0_160, %c696] : memref<4x768xf32, #tpu.memory_space<vmem>>, vector<4x24xf32>
    tpu.vector_store %arg3[%c0_160, %c696], %353 {strides = array<i32>} : memref<4x768xf32, #tpu.memory_space<vmem>>, vector<4x24xf32>,
    %355 = vector.extract_strided_slice %292 {offsets = [0, 360], sizes = [4, 24], strides = [1, 1]} : vector<4x384xf32> to vector<4x24xf32>
    %c0_161 = arith.constant 0 : index
    %c720 = arith.constant 720 : index
    %356 = vector.load %arg3[%c0_161, %c720] : memref<4x768xf32, #tpu.memory_space<vmem>>, vector<4x24xf32>
    tpu.vector_store %arg3[%c0_161, %c720], %355 {strides = array<i32>} : memref<4x768xf32, #tpu.memory_space<vmem>>, vector<4x24xf32>,
    %357 = vector.extract_strided_slice %294 {offsets = [0, 360], sizes = [4, 24], strides = [1, 1]} : vector<4x384xf32> to vector<4x24xf32>
    %c0_162 = arith.constant 0 : index
    %c744 = arith.constant 744 : index
    %358 = vector.load %arg3[%c0_162, %c744] : memref<4x768xf32, #tpu.memory_space<vmem>>, vector<4x24xf32>
    tpu.vector_store %arg3[%c0_162, %c744], %357 {strides = array<i32>} : memref<4x768xf32, #tpu.memory_space<vmem>>, vector<4x24xf32>,
    return
  }
  func.func @transform_0(%arg0: i32) -> (i32, i32) {
    %c0_i32 = arith.constant 0 : i32
    %c0_i32_0 = arith.constant 0 : i32
    return %arg0, %c0_i32 : i32, i32
  }
  func.func @transform_1(%arg0: i32) -> (i32, i32) {
    %c0_i32 = arith.constant 0 : i32
    %c0_i32_0 = arith.constant 0 : i32
    return %arg0, %c0_i32 : i32, i32
  }
  func.func @transform_2(%arg0: i32) -> (i32, i32) {
    %c0_i32 = arith.constant 0 : i32
    %c0_i32_0 = arith.constant 0 : i32
    return %arg0, %c0_i32 : i32, i32
  }
}

</mosaic_0001>

<bundles_post_ra>
// kernel: tpu_custom_call.1
= control target key start
LH: loop header
LB: loop body
LE: loop exit
PB: predicated region body
PF: predicated region fallthrough
CT: control target
= control target key end

     0   :  { %7 = vsyncpa [#allocation3], 0  ;;  %s2590_s0 = inlined_call_operand.hbm [shape: f32[4,48], index: 0, kind: input, shape index: {}]   ;;  %s2591_s1 = inlined_call_operand.hbm [shape: f32[4,384], index: 1, kind: input, shape index: {}]   ;;  %s2592_s2 = inlined_call_operand.hbm [shape: f32[4,768], index: 2, kind: output, shape index: {}]  }
   0x1   :  { %8 = vsyncpa [#allocation6], 0 }
   0x2   :  { %9 = vsyncpa [#allocation4], 0  ;;  %s1614_s9 = smov [#allocation2]   ;;  %s1615_s11 = smov [#allocation5]  }
   0x3   :  { %s16_s10 = sshll.u32 %s1614_s9, 4  ;;  %s26_s12 = sshll.u32 %s1615_s11, 4  ;;  %s17_s10 = int_to_ptr.vmem [resolvable:$true] %s16_s10  ;;  %s27_s12 = int_to_ptr.vmem [resolvable:$true] %s26_s12 }
   0x4   :  { %s1542_s15 = scalar_lea.hbm %s2590_s0, 64 }
   0x5   :  { %p1543_p0 = scmp.ne.s32.totalorder %s2590_s0, %s1542_s15  ;;  %p1546_p1 = scmp.lt.u32.totalorder %s1542_s15, %s2590_s0 }
   0x7   :  { %p1548_p2 = pnand %p1546_p1, %p1543_p0 }
   0x9   :  { %1551 = shalt.err (!%p1548_p2)
}
   0xa   :  { %s1552_s20 = scalar_lea.vmem %s17_s10, 64  ;;  %p1557_p4 = scmp.lt.s32.totalorder %s17_s10, %s17_s10 }
   0xb   :  { %p1553_p3 = scmp.ne.s32.totalorder %s17_s10, %s1552_s20  ;;  %p1558_p5 = scmp.lt.s32.totalorder %s1552_s20, %s1552_s20 }
   0xd   :  { %p1559_p6 = por %p1558_p5, %p1557_p4 }
   0xf   :  { %p1560_p7 = pnand %p1559_p6, %p1553_p3 }
  0x11   :  { %1563 = shalt.err (!%p1560_p7)
}
  0x12   :  { %19 = dma.hbm_to_vmem [thread:$0]  %s2590_s0, 64, %s17_s10, [#allocation3]  }
  0x13   :  { %s1564_s25 = scalar_lea.hbm %s2591_s1, 192 }
  0x14   :  { %p1565_p8 = scmp.ne.s32.totalorder %s2591_s1, %s1564_s25  ;;  %p1568_p9 = scmp.lt.u32.totalorder %s1564_s25, %s2591_s1 }
  0x16   :  { %p1570_p10 = pnand %p1568_p9, %p1565_p8 }
  0x18   :  { %1573 = shalt.err (!%p1570_p10)
}
  0x19   :  { %s1574_s30 = scalar_lea.vmem %s27_s12, 192  ;;  %p1579_p12 = scmp.lt.s32.totalorder %s27_s12, %s27_s12 }
  0x1a   :  { %p1575_p11 = scmp.ne.s32.totalorder %s27_s12, %s1574_s30  ;;  %p1580_p13 = scmp.lt.s32.totalorder %s1574_s30, %s1574_s30 }
  0x1c   :  { %p1581_p0 = por %p1580_p13, %p1579_p12 }
  0x1e   :  { %p1582_p1 = pnand %p1581_p0, %p1575_p11 }
  0x20   :  { %1585 = shalt.err (!%p1582_p1)
}
  0x21   :  { %29 = dma.hbm_to_vmem [thread:$0]  %s2591_s1, 192, %s27_s12, [#allocation6]  }
  0x22   :  { %1608 = dma.done.wait [#allocation3], 64  }
  0x23   :  { %1609 = vsyncadd [#allocation3], 4294967232 }
  0x24   :  { %1610 = dma.done.wait [#allocation6], 192  }
  0x25   :  { %1611 = vsyncadd [#allocation6], 4294967104  ;;  %v1698_v0 = vld [vmem:[#allocation2] sm:$0xf]  ;;  %s1616_s4 = smov 9   ;;  %s1617_s5 = smov 3  }
  0x26   :  { %2596 = vst [vmem:[#allocation11_spill] sm:$0xff] %v1698_v0  ;;  %v1701_v1 = vmul.f32 8.0, %v1698_v0  ;;  %v1704_v2 = vmul.f32 2.0, %v1698_v0  ;;  %v1711_v3 = vmul.f32 16.0, %v1698_v0  ;;  %v1714_v4 = vmul.f32 4.0, %v1698_v0  ;;  %s1618_s1 = smov 12  }
  0x27   :  { %s1619_s6 = smov 6   ;;  %v1721_v5 = vmul.f32 64.0, %v1698_v0  ;;  %v1724_v6 = vmul.f32 32.0, %v1698_v0  ;;  %s1620_s7 = smov 18   ;;  %v1729_v7 = vmul.f32 128.0, %v1698_v0  ;;  %vm72_vm0 = vcmask 23552  }
  0x28   :  { %53 = vrot.lane.b32.xlu1 %v1701_v1, %s1616_s4  ;;  %45 = vrot.lane.b32.xlu0 %v1704_v2, %s1617_s5  ;;  %s1621_s8 = smov 15   ;;  %s1622_s9 = smov 125   ;;  %vm74_vm1 = vcmask 48128   ;;  %vm76_vm2 = vcmask 72704   ;;  %vm78_vm3 = vcmask 97280   ;;  %vm80_vm4 = vcmask 121856  }
  0x29   :  { %s1623_s10 = smov 21   ;;  %s1624_s11 = smov 122   ;;  %vm82_vm5 = vcmask 146432   ;;  %vm84_vm6 = vcmask 171008   ;;  %vm591_vm7 = vcmask 195584   ;;  %vm593_vm8 = vcmask 392192  }
  0x2a   :  { %s1625_s12 = smov 119   ;;  %s1626_s13 = smov 113   ;;  %vm595_vm9 = vcmask 588800   ;;  %vm597_vm10 = vcmask 785408   ;;  %vm599_vm11 = vcmask 982016   ;;  %vm601_vm12 = vcmask 130048  }
  0x2b   :  { %s1627_s14 = smov 110   ;;  %s1628_s15 = smov 116   ;;  %vm2595_vm13 = vcmask 326656   ;;  %vm2594_vm15 = vcmask 523264  }
  0x2c   :  { %57 = vrot.lane.b32.xlu1 %v1711_v3, %s1618_s1  ;;  %49 = vrot.lane.b32.xlu0 %v1714_v4, %s1619_s6  ;;  %s1629_s16 = smov 107   ;;  %s1630_s17 = smov 104  }
  0x2d   :  { %s1631_s18 = smov 101   ;;  %s1632_s19 = smov 98  }
  0x2e   :  { %s1633_s20 = smov 95   ;;  %s1634_s21 = smov 92  }
  0x2f   :  { %s1635_s22 = smov 89   ;;  %s1636_s23 = smov 86  }
  0x30   :  { %65 = vrot.lane.b32.xlu1 %v1721_v5, %s1620_s7  ;;  %61 = vrot.lane.b32.xlu0 %v1724_v6, %s1621_s8  ;;  %s1637_s24 = smov 83   ;;  %s1638_s25 = smov 120  }
  0x31   :  { %s1639_s26 = smov 24   ;;  %s1640_s27 = smov 48  }
  0x32   :  { %s1641_s28 = smov 16   ;;  %s1642_s29 = smov 40  }
  0x33   :  { %s1643_s30 = smov 72   ;;  %s1644_s0 = smov 64  }
  0x34   :  { %87 = vrot.lane.b32.xlu1 %v1698_v0, %s1622_s9  ;;  %69 = vrot.lane.b32.xlu0 %v1729_v7, %s1623_s10  ;;  %s1645_s3 = smov 96  }
  0x38   :  { %93 = vrot.lane.b32.xlu1 %v1701_v1, %s1619_s6  ;;  %90 = vrot.lane.b32.xlu0 %v1714_v4, %s1617_s5 }
  0x3c   :  { %99 = vrot.lane.b32.xlu1 %v1724_v6, %s1618_s1  ;;  %96 = vrot.lane.b32.xlu0 %v1711_v3, %s1616_s4 }
  0x40   :  { %105 = vrot.lane.b32.xlu1 %v1729_v7, %s1620_s7  ;;  %102 = vrot.lane.b32.xlu0 %v1721_v5, %s1621_s8  ;;  %s1650_s7 = smov 56  }
  0x44   :  { %118 = vrot.lane.b32.xlu1 %v1704_v2, %s1622_s9  ;;  %115 = vrot.lane.b32.xlu0 %v1698_v0, %s1624_s11 }
  0x48   :  { %124 = vrot.lane.b32.xlu1 %v1711_v3, %s1619_s6  ;;  %121 = vrot.lane.b32.xlu0 %v1701_v1, %s1617_s5 }
  0x4c   :  { %130 = vrot.lane.b32.xlu1 %v1721_v5, %s1618_s1  ;;  %127 = vrot.lane.b32.xlu0 %v1724_v6, %s1616_s4 }
  0x50   :  { %143 = vrot.lane.b32.xlu1 %v1698_v0, %s1625_s12  ;;  %133 = vrot.lane.b32.xlu0 %v1729_v7, %s1621_s8  ;;  %s1651_s8 = smov 80  }
  0x54   :  { %199 = vrot.lane.b32.xlu1 %v1698_v0, %s1626_s13  ;;  %146 = vrot.lane.b32.xlu0 %v1704_v2, %s1624_s11 }
  0x58   :  { %227 = vrot.lane.b32.xlu1 %v1698_v0, %s1627_s14  ;;  %202 = vrot.lane.b32.xlu0 %v1704_v2, %s1628_s15 }
  0x5c   :  { %205 = vrot.lane.b32.xlu1 %v1714_v4, %s1625_s12  ;;  %230 = vrot.lane.b32.xlu0 %v1704_v2, %s1626_s13 }
  0x60   :  { %255 = vrot.lane.b32.xlu1 %v1698_v0, %s1629_s16  ;;  %233 = vrot.lane.b32.xlu0 %v1714_v4, %s1628_s15 }
  0x64   :  { %208 = vrot.lane.b32.xlu1 %v1701_v1, %s1624_s11  ;;  %258 = vrot.lane.b32.xlu0 %v1704_v2, %s1627_s14 }
  0x68   :  { %261 = vrot.lane.b32.xlu1 %v1714_v4, %s1626_s13  ;;  %236 = vrot.lane.b32.xlu0 %v1701_v1, %s1625_s12 }
  0x6c   :  { %286 = vrot.lane.b32.xlu1 %v1704_v2, %s1629_s16  ;;  %283 = vrot.lane.b32.xlu0 %v1698_v0, %s1630_s17 }
  0x70   :  { %171 = vrot.lane.b32.xlu1 %v1698_v0, %s1628_s15  ;;  %149 = vrot.lane.b32.xlu0 %v1714_v4, %s1622_s9 }
  0x74   :  { %211 = vrot.lane.b32.xlu1 %v1711_v3, %s1622_s9  ;;  %174 = vrot.lane.b32.xlu0 %v1704_v2, %s1625_s12 }
  0x78   :  { %264 = vrot.lane.b32.xlu1 %v1701_v1, %s1628_s15  ;;  %239 = vrot.lane.b32.xlu0 %v1711_v3, %s1624_s11 }
  0x7c   :  { %314 = vrot.lane.b32.xlu1 %v1698_v0, %s1631_s18  ;;  %289 = vrot.lane.b32.xlu0 %v1714_v4, %s1627_s14 }
  0x80   :  { %177 = vrot.lane.b32.xlu1 %v1714_v4, %s1624_s11  ;;  %317 = vrot.lane.b32.xlu0 %v1704_v2, %s1630_s17 }
  0x84   :  { %267 = vrot.lane.b32.xlu1 %v1711_v3, %s1625_s12  ;;  %242 = vrot.lane.b32.xlu0 %v1724_v6, %s1622_s9 }
  0x88   :  { %320 = vrot.lane.b32.xlu1 %v1714_v4, %s1629_s16  ;;  %292 = vrot.lane.b32.xlu0 %v1701_v1, %s1626_s13 }
  0x8c   :  { %348 = vrot.lane.b32.xlu1 %v1704_v2, %s1631_s18  ;;  %345 = vrot.lane.b32.xlu0 %v1698_v0, %s1632_s19 }
  0x90   :  { %180 = vrot.lane.b32.xlu1 %v1701_v1, %s1622_s9  ;;  %152 = vrot.lane.b32.xlu0 %v1711_v3, %s1617_s5 }
  0x94   :  { %270 = vrot.lane.b32.xlu1 %v1724_v6, %s1624_s11  ;;  %214 = vrot.lane.b32.xlu0 %v1721_v5, %s1617_s5 }
  0x98   :  { %323 = vrot.lane.b32.xlu1 %v1701_v1, %s1627_s14  ;;  %295 = vrot.lane.b32.xlu0 %v1711_v3, %s1628_s15 }
  0x9a   :  { %v1831_v8 = vpop.permute.xlu1 %53  ;;  %v1833_v9 = vpop.permute.xlu0 %45 }
  0x9b   :  { %2597 = vst [vmem:[#allocation12_spill] sm:$0xff] %v1831_v8 }
  0x9c   :  { %376 = vrot.lane.b32.xlu1 %v1698_v0, %s1633_s20  ;;  %351 = vrot.lane.b32.xlu0 %v1714_v4, %s1630_s17 }
  0x9e   :  { %v1839_v10 = vpop.permute.xlu1 %57  ;;  %v1841_v11 = vpop.permute.xlu0 %49 }
  0x9f   :  { %2598 = vst [vmem:[#allocation13_spill] sm:$0xff] %v1839_v10  ;;  %2599 = vst [vmem:[#allocation14_spill] sm:$0xff] %v1841_v11 }
  0xa0   :  { %155 = vrot.lane.b32.xlu1 %v1724_v6, %s1619_s6  ;;  %379 = vrot.lane.b32.xlu0 %v1704_v2, %s1632_s19 }
  0xa2   :  { %v1847_v12 = vpop.permute.xlu1 %65  ;;  %v1849_v13 = vpop.permute.xlu0 %61 }
  0xa3   :  { %2600 = vst [vmem:[#allocation15_spill] sm:$0xff] %v1847_v12  ;;  %2601 = vst [vmem:[#allocation16_spill] sm:$0xff] %v1849_v13 }
  0xa4   :  { %245 = vrot.lane.b32.xlu1 %v1729_v7, %s1617_s5  ;;  %217 = vrot.lane.b32.xlu0 %v1729_v7, %s1619_s6 }
  0xa6   :  { %v1855_v14 = vpop.permute.xlu1 %87  ;;  %v1857_v15 = vpop.permute.xlu0 %69 }
  0xa7   :  { %2602 = vst [vmem:[#allocation17_spill] sm:$0xff] %v1857_v15  ;;  %v108_v15 = vsel %vm72_vm0, %v1855_v14, %v1704_v2 }
  0xa8   :  { %298 = vrot.lane.b32.xlu1 %v1724_v6, %s1625_s12  ;;  %273 = vrot.lane.b32.xlu0 %v1721_v5, %s1622_s9 }
  0xaa   :  { %v1863_v16 = vpop.permute.xlu1 %93  ;;  %v1865_v17 = vpop.permute.xlu0 %90 }
  0xab   :  { %v109_v10 = vsel %vm74_vm1, %v108_v15, %v1865_v17 }
  0xac   :  { %354 = vrot.lane.b32.xlu1 %v1701_v1, %s1629_s16  ;;  %326 = vrot.lane.b32.xlu0 %v1711_v3, %s1626_s13  ;;  %v110_v8 = vsel %vm76_vm2, %v109_v10, %v1863_v16 }
  0xae   :  { %v1871_v18 = vpop.permute.xlu1 %99  ;;  %v1873_v19 = vpop.permute.xlu0 %96 }
  0xaf   :  { %v111_v14 = vsel %vm78_vm3, %v110_v8, %v1873_v19 }
  0xb0   :  { %407 = vrot.lane.b32.xlu1 %v1698_v0, %s1634_s21  ;;  %382 = vrot.lane.b32.xlu0 %v1714_v4, %s1631_s18  ;;  %v112_v10 = vsel %vm80_vm4, %v111_v14, %v1871_v18 }
  0xb2   :  { %v1879_v20 = vpop.permute.xlu1 %105  ;;  %v1881_v21 = vpop.permute.xlu0 %102 }
  0xb4   :  { %158 = vrot.lane.b32.xlu1 %v1721_v5, %s1616_s4  ;;  %410 = vrot.lane.b32.xlu0 %v1704_v2, %s1633_s20 }
  0xb6   :  { %v1887_v22 = vpop.permute.xlu1 %118  ;;  %v1889_v23 = vpop.permute.xlu0 %115 }
  0xb7   :  { %v136_v15 = vsel %vm72_vm0, %v1889_v23, %v1887_v22 }
  0xb8   :  { %301 = vrot.lane.b32.xlu1 %v1721_v5, %s1624_s11  ;;  %183 = vrot.lane.b32.xlu0 %v1724_v6, %s1617_s5  ;;  %v137_v16 = vsel %vm74_vm1, %v136_v15, %v1714_v4  ;;  %s1647_s5 = smov 112  }
  0xba   :  { %v1895_v24 = vpop.permute.xlu1 %124  ;;  %v1897_v25 = vpop.permute.xlu0 %121 }
  0xbc   :  { %357 = vrot.lane.b32.xlu1 %v1711_v3, %s1627_s14  ;;  %329 = vrot.lane.b32.xlu0 %v1724_v6, %s1628_s15 }
  0xbe   :  { %v1903_v26 = vpop.permute.xlu1 %130  ;;  %v1905_v27 = vpop.permute.xlu0 %127 }
  0xc0   :  { %413 = vrot.lane.b32.xlu1 %v1714_v4, %s1632_s19  ;;  %385 = vrot.lane.b32.xlu0 %v1701_v1, %s1630_s17 }
  0xc2   :  { %v1911_v28 = vpop.permute.xlu1 %143  ;;  %v1913_v29 = vpop.permute.xlu0 %133 }
  0xc4   :  { %441 = vrot.lane.b32.xlu1 %v1704_v2, %s1634_s21  ;;  %438 = vrot.lane.b32.xlu0 %v1698_v0, %s1635_s22 }
  0xc6   :  { %v1919_v30 = vpop.permute.xlu1 %199  ;;  %v1921_v31 = vpop.permute.xlu0 %146 }
  0xc8   :  { %186 = vrot.lane.b32.xlu1 %v1721_v5, %s1619_s6  ;;  %161 = vrot.lane.b32.xlu0 %v1729_v7, %s1618_s1  ;;  %s1648_s1 = smov 8   ;;  %s1649_s6 = smov 32  }
  0xca   :  { %v1927_v32 = vpop.permute.xlu1 %227  ;;  %v1929_v33 = vpop.permute.xlu0 %202 }
  0xcb   :  { %v220_v17 = vsel %vm72_vm0, %v1919_v30, %v1929_v33  ;;  %v113_v30 = vsel %vm82_vm5, %v112_v10, %v1881_v21  ;;  %v138_v33 = vsel %vm76_vm2, %v137_v16, %v1897_v25 }
  0xcc   :  { %332 = vrot.lane.b32.xlu1 %v1721_v5, %s1625_s12  ;;  %304 = vrot.lane.b32.xlu0 %v1729_v7, %s1622_s9  ;;  %v139_v25 = vsel %vm78_vm3, %v138_v33, %v1895_v24  ;;  %s1658_s9 = smov [#allocation7]  }
  0xcd   :  { %s1439_s10 = sshll.u32 %s1658_s9, 4  ;;  %s1440_s10 = int_to_ptr.vmem [resolvable:$true] %s1439_s10 }
  0xce   :  { %v1935_v34 = vpop.permute.xlu1 %205  ;;  %v1937_v35 = vpop.permute.xlu0 %230  ;;  %p1591_p3 = scmp.lt.s32.totalorder %s1440_s10, %s1440_s10 }
  0xd0   :  { %388 = vrot.lane.b32.xlu1 %v1711_v3, %s1629_s16  ;;  %360 = vrot.lane.b32.xlu0 %v1724_v6, %s1626_s13 }
  0xd2   :  { %v1943_v36 = vpop.permute.xlu1 %255  ;;  %v1945_v37 = vpop.permute.xlu0 %233 }
  0xd4   :  { %444 = vrot.lane.b32.xlu1 %v1714_v4, %s1633_s20  ;;  %416 = vrot.lane.b32.xlu0 %v1701_v1, %s1631_s18 }
  0xd6   :  { %v1951_v38 = vpop.permute.xlu1 %208  ;;  %v1953_v39 = vpop.permute.xlu0 %258 }
  0xd8   :  { %472 = vrot.lane.b32.xlu1 %v1704_v2, %s1635_s22  ;;  %469 = vrot.lane.b32.xlu0 %v1698_v0, %s1636_s23 }
  0xda   :  { %v1958_v40 = vpop.permute.xlu1 %261  ;;  %v1960_v41 = vpop.permute.xlu0 %236 }
  0xdc   :  { %335 = vrot.lane.b32.xlu1 %v1729_v7, %s1624_s11  ;;  %189 = vrot.lane.b32.xlu0 %v1729_v7, %s1616_s4  ;;  %s1646_s4 = smov 88   ;;  %s1586_s11 = scalar_lea.vmem %s1440_s10, 384 }
  0xdd   :  { %p1587_p2 = scmp.ne.s32.totalorder %s1440_s10, %s1586_s11  ;;  %p1592_p4 = scmp.lt.s32.totalorder %s1586_s11, %s1586_s11 }
  0xde   :  { %v1966_v42 = vpop.permute.xlu1 %286  ;;  %v1968_v43 = vpop.permute.xlu0 %283 }
  0xdf   :  { %p1593_p5 = por %p1592_p4, %p1591_p3 }
  0xe0   :  { %391 = vrot.lane.b32.xlu1 %v1724_v6, %s1627_s14  ;;  %363 = vrot.lane.b32.xlu0 %v1721_v5, %s1628_s15 }
  0xe1   :  { %p1594_p6 = pnand %p1593_p5, %p1587_p2 }
  0xe2   :  { %v1974_v44 = vpop.permute.xlu1 %171  ;;  %v1976_v45 = vpop.permute.xlu0 %149 }
  0xe4   :  { %447 = vrot.lane.b32.xlu1 %v1701_v1, %s1632_s19  ;;  %419 = vrot.lane.b32.xlu0 %v1711_v3, %s1630_s17 }
  0xe6   :  { %v212_v46 = vpop.permute.xlu1 %211  ;;  %v1982_v47 = vpop.permute.xlu0 %174 }
  0xe8   :  { %500 = vrot.lane.b32.xlu1 %v1698_v0, %s1637_s24  ;;  %475 = vrot.lane.b32.xlu0 %v1714_v4, %s1634_s21  ;;  %v221_v0 = vsel %vm74_vm1, %v220_v17, %v1935_v34 }
  0xe9   :  { %v222_v8 = vsel %vm76_vm2, %v221_v0, %v1951_v38  ;;  %v248_v0 = vsel %vm72_vm0, %v1927_v32, %v1937_v35  ;;  %v114_v38 = vsel %vm84_vm6, %v113_v30, %v1879_v20 }
  0xea   :  { %v1987_v48 = vpop.permute.xlu1 %264  ;;  %v1989_v49 = vpop.permute.xlu0 %239  ;;  %v223_v19 = vsel %vm78_vm3, %v222_v8, %v212_v46  ;;  %v249_v18 = vsel %vm74_vm1, %v248_v0, %v1945_v37  ;;  %v140_v46 = vsel %vm80_vm4, %v139_v25, %v1905_v27 }
  0xeb   :  { %v224_v21 = vsel %vm80_vm4, %v223_v19, %v1724_v6  ;;  %v141_v27 = vsel %vm82_vm5, %v140_v46, %v1903_v26 }
  0xec   :  { %366 = vrot.lane.b32.xlu1 %v1729_v7, %s1625_s12  ;;  %503 = vrot.lane.b32.xlu0 %v1704_v2, %s1636_s23 }
  0xee   :  { %v1994_v50 = vpop.permute.xlu1 %314  ;;  %v1996_v51 = vpop.permute.xlu0 %289 }
  0xf0   :  { %422 = vrot.lane.b32.xlu1 %v1724_v6, %s1629_s16  ;;  %394 = vrot.lane.b32.xlu0 %v1721_v5, %s1626_s13 }
  0xf2   :  { %v2002_v52 = vpop.permute.xlu1 %177  ;;  %v2004_v53 = vpop.permute.xlu0 %317 }
  0xf4   :  { %478 = vrot.lane.b32.xlu1 %v1701_v1, %s1633_s20  ;;  %450 = vrot.lane.b32.xlu0 %v1711_v3, %s1631_s18 }
  0xf6   :  { %v2010_v54 = vpop.permute.xlu1 %267  ;;  %v2012_v55 = vpop.permute.xlu0 %242 }
  0xf8   :  { %397 = vrot.lane.b32.xlu1 %v1729_v7, %s1628_s15  ;;  %506 = vrot.lane.b32.xlu0 %v1714_v4, %s1635_s22  ;;  %v250_v4 = vsel %vm76_vm2, %v249_v18, %v1960_v41 }
  0xf9   :  { %v251_v32 = vsel %vm78_vm3, %v250_v4, %v1989_v49 }
  0xfa   :  { %v2018_v56 = vpop.permute.xlu1 %320  ;;  %v2020_v57 = vpop.permute.xlu0 %292  ;;  %v252_v24 = vsel %vm80_vm4, %v251_v32, %v2012_v55 }
  0xfc   :  { %453 = vrot.lane.b32.xlu1 %v1724_v6, %s1630_s17  ;;  %425 = vrot.lane.b32.xlu0 %v1721_v5, %s1627_s14 }
  0xfe   :  { %v2026_v58 = vpop.permute.xlu1 %348  ;;  %v2028_v59 = vpop.permute.xlu0 %345 }
 0x100   :  { %509 = vrot.lane.b32.xlu1 %v1701_v1, %s1634_s21  ;;  %481 = vrot.lane.b32.xlu0 %v1711_v3, %s1632_s19 }
 0x102   :  { %v2034_v60 = vpop.permute.xlu1 %180  ;;  %v2036_v61 = vpop.permute.xlu0 %152 }
 0x104   :  { %456 = vrot.lane.b32.xlu1 %v1721_v5, %s1629_s16  ;;  %428 = vrot.lane.b32.xlu0 %v1729_v7, %s1626_s13 }
 0x106   :  { %v2042_v62 = vpop.permute.xlu1 %270  ;;  %v215_v63 = vpop.permute.xlu0 %214 }
 0x107   :  { %v225_v34 = vsel %vm82_vm5, %v224_v21, %v215_v63  ;;  %v142_v63 = vsel %vm84_vm6, %v141_v27, %v1913_v29 }
 0x108   :  { %512 = vrot.lane.b32.xlu1 %v1711_v3, %s1633_s20  ;;  %484 = vrot.lane.b32.xlu0 %v1724_v6, %s1631_s18 }
 0x10a   :  { %v2051_v12 = vpop.permute.xlu1 %323  ;;  %v2053_v13 = vpop.permute.xlu0 %295 }
 0x10c   :  { %487 = vrot.lane.b32.xlu1 %v1721_v5, %s1630_s17  ;;  %459 = vrot.lane.b32.xlu0 %v1729_v7, %s1627_s14 }
 0x10e   :  { %v2063_v11 = vpop.permute.xlu1 %376  ;;  %v2065_v2 = vpop.permute.xlu0 %351 }
 0x110   :  { %490 = vrot.lane.b32.xlu1 %v1729_v7, %s1629_s16  ;;  %515 = vrot.lane.b32.xlu0 %v1724_v6, %s1632_s19  ;;  %v276_v6 = vsel %vm72_vm0, %v1943_v36, %v1953_v39  ;;  %v253_v39 = vsel %vm82_vm5, %v252_v24, %v1721_v5 }
 0x111   :  { %v277_v49 = vsel %vm74_vm1, %v276_v6, %v1958_v40 }
 0x112   :  { %v2088_v22 = vpop.permute.xlu1 %155  ;;  %v2090_v23 = vpop.permute.xlu0 %379  ;;  %v278_v20 = vsel %vm76_vm2, %v277_v49, %v1987_v48 }
 0x113   :  { %v279_v36 = vsel %vm78_vm3, %v278_v20, %v2010_v54 }
 0x114   :  { %521 = vrot.lane.b32.xlu1 %v1729_v7, %s1630_s17  ;;  %518 = vrot.lane.b32.xlu0 %v1721_v5, %s1631_s18  ;;  %v280_v14 = vsel %vm80_vm4, %v279_v36, %v2042_v62  ;;  %v338_v36 = vsel %vm72_vm0, %v1994_v50, %v2004_v53 }
 0x116   :  { %v246_v35 = vpop.permute.xlu1 %245  ;;  %v218_v37 = vpop.permute.xlu0 %217 }
 0x117   :  { %v226_v41 = vsel %vm84_vm6, %v225_v34, %v218_v37  ;;  %v254_v15 = vsel %vm84_vm6, %v253_v39, %v246_v35  ;;  %v307_v37 = vsel %vm72_vm0, %v1968_v43, %v1966_v42 }
 0x118   :  { %548 = vrot.lane.b32.xlu1 %v226_v41, %s1638_s25  ;;  %532 = vrot.lane.b32.xlu0 %v114_v38, %s1639_s26 }
 0x11a   :  { %v299_v55 = vpop.permute.xlu1 %298  ;;  %v274_v40 = vpop.permute.xlu0 %273 }
 0x11b   :  { %v281_v48 = vsel %vm82_vm5, %v280_v14, %v274_v40 }
 0x11c   :  { %536 = vrot.lane.b32.xlu1 %v142_v63, %s1640_s27  ;;  %552 = vrot.lane.b32.xlu0 %v254_v15, %s1641_s28  ;;  %v282_v54 = vsel %vm84_vm6, %v281_v48, %v1729_v7  ;;  %v164_v7 = vsel %vm72_vm0, %v1911_v28, %v1921_v31  ;;  %v308_v31 = vsel %vm74_vm1, %v307_v37, %v1996_v51 }
 0x11d   :  { %v165_v4 = vsel %vm74_vm1, %v164_v7, %v1976_v45  ;;  %v309_v46 = vsel %vm76_vm2, %v308_v31, %v2020_v57 }
 0x11e   :  { %v2144_v26 = vpop.permute.xlu1 %354  ;;  %v327_v5 = vpop.permute.xlu0 %326  ;;  %v166_v32 = vsel %vm76_vm2, %v165_v4, %v1701_v1 }
 0x11f   :  { %v167_v35 = vsel %vm78_vm3, %v166_v32, %v2036_v61  ;;  %v310_v61 = vsel %vm78_vm3, %v309_v46, %v2053_v13  ;;  %v192_v13 = vsel %vm72_vm0, %v1974_v44, %v1982_v47 }
 0x120   :  { %556 = vrot.lane.b32.xlu0 %v282_v54, %s1642_s29  ;;  %v168_v28 = vsel %vm80_vm4, %v167_v35, %v2088_v22  ;;  %v311_v42 = vsel %vm80_vm4, %v310_v61, %v299_v55  ;;  %v193_v27 = vsel %vm74_vm1, %v192_v13, %v2002_v52  ;;  %v339_v55 = vsel %vm74_vm1, %v338_v36, %v2018_v56 }
 0x121   :  { %v194_v39 = vsel %vm76_vm2, %v193_v27, %v2034_v60  ;;  %v340_v44 = vsel %vm76_vm2, %v339_v55, %v2051_v12 }
 0x122   :  { %v408_v29 = vpop.permute.xlu1 %407  ;;  %v2149_v62 = vpop.permute.xlu0 %382  ;;  %v341_v47 = vsel %vm78_vm3, %v340_v44, %v327_v5  ;;  %v195_v52 = vsel %vm78_vm3, %v194_v39, %v1711_v3 }
 0x126   :  { %v159_v17 = vpop.permute.xlu1 %158  ;;  %v411_v8 = vpop.permute.xlu0 %410 }
 0x127   :  { %v2152_v10 = vsel %vm72_vm0, %v408_v29, %v411_v8  ;;  %v169_v45 = vsel %vm82_vm5, %v168_v28, %v159_v17  ;;  %v369_v17 = vsel %vm72_vm0, %v2028_v59, %v2026_v58 }
 0x128   :  { %v370_v8 = vsel %vm74_vm1, %v369_v17, %v2065_v2  ;;  %v400_v2 = vsel %vm72_vm0, %v2063_v11, %v2090_v23 }
 0x12a   :  { %v302_v16 = vpop.permute.xlu1 %301  ;;  %v184_v19 = vpop.permute.xlu0 %183 }
 0x12b   :  { %v312_v43 = vsel %vm82_vm5, %v311_v42, %v302_v16  ;;  %v196_v50 = vsel %vm80_vm4, %v195_v52, %v184_v19 }
 0x12e   :  { %v2154_v30 = vpop.permute.xlu1 %357  ;;  %v330_v33 = vpop.permute.xlu0 %329 }
 0x12f   :  { %v342_v53 = vsel %vm80_vm4, %v341_v47, %v330_v33  ;;  %v371_v33 = vsel %vm76_vm2, %v370_v8, %v2144_v26  ;;  %v401_v26 = vsel %vm74_vm1, %v400_v2, %v2149_v62  ;;  %v2603_v8 = vld [vmem:[#allocation11_spill] sm:$0xff] }
 0x130   :  { %v372_v7 = vsel %vm78_vm3, %v371_v33, %v2154_v30 }
 0x132   :  { %v2156_v0 = vpop.permute.xlu1 %413  ;;  %v2158_v18 = vpop.permute.xlu0 %385 }
 0x133   :  { %v402_v28 = vsel %vm76_vm2, %v401_v26, %v2158_v18  ;;  %v432_v62 = vsel %vm74_vm1, %v2152_v10, %v2156_v0  ;;  %v2608_v26 = vld [vmem:[#allocation15_spill] sm:$0xff] }
 0x136   :  { %v442_v21 = vpop.permute.xlu1 %441  ;;  %v439_v25 = vpop.permute.xlu0 %438 }
 0x137   :  { %v2168_v34 = vsel %vm72_vm0, %v439_v25, %v442_v21 }
 0x13a   :  { %v187_v38 = vpop.permute.xlu1 %186  ;;  %v162_v1 = vpop.permute.xlu0 %161 }
 0x13b   :  { %v170_v6 = vsel %vm84_vm6, %v169_v45, %v162_v1  ;;  %v197_v60 = vsel %vm82_vm5, %v196_v50, %v187_v38 }
 0x13c   :  { %540 = vrot.lane.b32.xlu1 %v170_v6, %s1643_s30 }
 0x13e   :  { %v333_v51 = vpop.permute.xlu1 %332  ;;  %v305_v22 = vpop.permute.xlu0 %304 }
 0x13f   :  { %v313_v24 = vsel %vm84_vm6, %v312_v43, %v305_v22  ;;  %v343_v56 = vsel %vm82_vm5, %v342_v53, %v333_v51 }
 0x140   :  { %560 = vrot.lane.b32.xlu0 %v313_v24, %s1644_s0 }
 0x142   :  { %v389_v57 = vpop.permute.xlu1 %388  ;;  %v361_v41 = vpop.permute.xlu0 %360 }
 0x143   :  { %v373_v4 = vsel %vm80_vm4, %v372_v7, %v361_v41  ;;  %v403_v31 = vsel %vm78_vm3, %v402_v28, %v389_v57 }
 0x146   :  { %v2190_v49 = vpop.permute.xlu1 %444  ;;  %v417_v20 = vpop.permute.xlu0 %416 }
 0x147   :  { %v433_v42 = vsel %vm76_vm2, %v432_v62, %v417_v20  ;;  %v463_v10 = vsel %vm74_vm1, %v2168_v34, %v2190_v49 }
 0x14a   :  { %v2204_v40 = vpop.permute.xlu1 %472  ;;  %v2206_v63 = vpop.permute.xlu0 %469 }
 0x14b   :  { %v493_v36 = vsel %vm72_vm0, %v2206_v63, %v2204_v40 }
 0x14e   :  { %v336_v14 = vpop.permute.xlu1 %335  ;;  %v190_v15 = vpop.permute.xlu0 %189 }
 0x14f   :  { %v344_v48 = vsel %vm84_vm6, %v343_v56, %v336_v14  ;;  %v198_v54 = vsel %vm84_vm6, %v197_v60, %v190_v15 }
 0x150   :  { %544 = vrot.lane.b32.xlu1 %v198_v54, %s1645_s3  ;;  %564 = vrot.lane.b32.xlu0 %v344_v48, %s1646_s4 }
 0x152   :  { %v392_v3 = vpop.permute.xlu1 %391  ;;  %v364_v12 = vpop.permute.xlu0 %363 }
 0x153   :  { %v374_v21 = vsel %vm82_vm5, %v373_v4, %v364_v12  ;;  %v404_v45 = vsel %vm80_vm4, %v403_v31, %v392_v3  ;;  %v2605_v4 = vld [vmem:[#allocation12_spill] sm:$0xff] }
 0x156   :  { %v448_v5 = vpop.permute.xlu1 %447  ;;  %v420_v29 = vpop.permute.xlu0 %419 }
 0x157   :  { %v434_v43 = vsel %vm78_vm3, %v433_v42, %v420_v29  ;;  %v464_v20 = vsel %vm76_vm2, %v463_v10, %v448_v5 }
 0x15a   :  { %v501_v16 = vpop.permute.xlu1 %500  ;;  %v476_v19 = vpop.permute.xlu0 %475 }
 0x15b   :  { %v494_v55 = vsel %vm74_vm1, %v493_v36, %v476_v19  ;;  %v2604_v19 = vld [vmem:[#allocation14_spill] sm:$0xff] }
 0x15e   :  { %v367_v25 = vpop.permute.xlu1 %366  ;;  %v504_v32 = vpop.permute.xlu0 %503 }
 0x15f   :  { %v375_v35 = vsel %vm84_vm6, %v374_v21, %v367_v25  ;;  %v524_v40 = vsel %vm72_vm0, %v501_v16, %v504_v32  ;;  %v73_v16 = vsel %vm72_vm0, %v2603_v8, %v1833_v9  ;;  %v2606_v25 = vld [vmem:[#allocation13_spill] sm:$0xff]  ;;  %vm607_vm0 = vcmask 719872  }
 0x160   :  { %568 = vrot.lane.b32.xlu1 %v375_v35, %s1647_s5  ;;  %v75_v33 = vsel %vm74_vm1, %v73_v16, %v2604_v19 }
 0x161   :  { %v77_v21 = vsel %vm76_vm2, %v75_v33, %v2605_v4 }
 0x162   :  { %v423_v58 = vpop.permute.xlu1 %422  ;;  %v395_v59 = vpop.permute.xlu0 %394  ;;  %v79_v32 = vsel %vm78_vm3, %v77_v21, %v2606_v25 }
 0x163   :  { %v405_v38 = vsel %vm82_vm5, %v404_v45, %v395_v59  ;;  %v435_v51 = vsel %vm80_vm4, %v434_v43, %v423_v58  ;;  %v2607_v58 = vld [vmem:[#allocation16_spill] sm:$0xff] }
 0x164   :  { %v81_v59 = vsel %vm80_vm4, %v79_v32, %v2607_v58 }
 0x166   :  { %v479_v30 = vpop.permute.xlu1 %478  ;;  %v451_v37 = vpop.permute.xlu0 %450 }
 0x167   :  { %v465_v27 = vsel %vm78_vm3, %v464_v20, %v451_v37  ;;  %v495_v34 = vsel %vm76_vm2, %v494_v55, %v479_v30  ;;  %v83_v30 = vsel %vm82_vm5, %v81_v59, %v2608_v26  ;;  %v2609_v37 = vld [vmem:[#allocation17_spill] sm:$0xff] }
 0x168   :  { %v85_v28 = vsel %vm84_vm6, %v83_v30, %v2609_v37 }
 0x16a   :  { %v398_v1 = vpop.permute.xlu1 %397  ;;  %v507_v46 = vpop.permute.xlu0 %506 }
 0x16b   :  { %v406_v6 = vsel %vm84_vm6, %v405_v38, %v398_v1  ;;  %v525_v14 = vsel %vm74_vm1, %v524_v40, %v507_v46  ;;  %vm609_vm1 = vcmask 916480   ;;  %v1655_v40 = vmov 2102212464  }
 0x16c   :  { %572 = vrot.lane.b32.xlu0 %v406_v6, %s1648_s1 }
 0x16e   :  { %v454_v11 = vpop.permute.xlu1 %453  ;;  %v426_v23 = vpop.permute.xlu0 %425 }
 0x16f   :  { %v436_v22 = vsel %vm82_vm5, %v435_v51, %v426_v23  ;;  %v466_v39 = vsel %vm80_vm4, %v465_v27, %v454_v11 }
 0x172   :  { %v510_v18 = vpop.permute.xlu1 %509  ;;  %v482_v61 = vpop.permute.xlu0 %481 }
 0x173   :  { %v496_v50 = vsel %vm78_vm3, %v495_v34, %v482_v61  ;;  %v526_v48 = vsel %vm76_vm2, %v525_v14, %v510_v18  ;;  %v1656_v14 = vmov 920167782  }
 0x176   :  { %v457_v24 = vpop.permute.xlu1 %456  ;;  %v429_v57 = vpop.permute.xlu0 %428 }
 0x177   :  { %v437_v41 = vsel %vm84_vm6, %v436_v22, %v429_v57  ;;  %v467_v44 = vsel %vm82_vm5, %v466_v39, %v457_v24  ;;  %v1652_v39 = vmov 683565275  }
 0x178   :  { %576 = vrot.lane.b32.xlu1 %v437_v41, %s1649_s6 }
 0x17a   :  { %v513_v0 = vpop.permute.xlu1 %512  ;;  %v485_v13 = vpop.permute.xlu0 %484 }
 0x17b   :  { %v497_v53 = vsel %vm80_vm4, %v496_v50, %v485_v13  ;;  %v527_v54 = vsel %vm78_vm3, %v526_v48, %v513_v0 }
 0x17e   :  { %v488_v47 = vpop.permute.xlu1 %487  ;;  %v460_v52 = vpop.permute.xlu0 %459 }
 0x17f   :  { %v468_v49 = vsel %vm84_vm6, %v467_v44, %v460_v52  ;;  %v498_v63 = vsel %vm82_vm5, %v497_v53, %v488_v47  ;;  %v1653_v44 = vmov 2475754826  }
 0x180   :  { %580 = vrot.lane.b32.xlu0 %v468_v49, %s1650_s7  ;;  %v1654_v49 = vmov 2131351028  }
 0x182   :  { %v491_v60 = vpop.permute.xlu1 %490  ;;  %v516_v56 = vpop.permute.xlu0 %515 }
 0x183   :  { %v499_v15 = vsel %vm84_vm6, %v498_v63, %v491_v60  ;;  %v528_v3 = vsel %vm80_vm4, %v527_v54, %v516_v56  ;;  %v1657_v54 = vmov 1326507024  }
 0x184   :  { %584 = vrot.lane.b32.xlu1 %v499_v15, %s1651_s8 }
 0x186   :  { %v522_v12 = vpop.permute.xlu1 %521  ;;  %v519_v5 = vpop.permute.xlu0 %518 }
 0x187   :  { %v529_v29 = vsel %vm82_vm5, %v528_v3, %v519_v5 }
 0x188   :  { %v530_v17 = vsel %vm84_vm6, %v529_v29, %v522_v12 }
 0x189   :  { %588 = vrot.lane.b32.xlu0 %v530_v17, %s1630_s17 }
 0x18a   :  { %v549_v7 = vpop.permute.xlu1 %548  ;;  %v533_v2 = vpop.permute.xlu0 %532 }
 0x18b   :  { %v592_v31 = vsel %vm591_vm7, %v85_v28, %v533_v2 }
 0x18e   :  { %v537_v35 = vpop.permute.xlu1 %536  ;;  %v553_v38 = vpop.permute.xlu0 %552 }
 0x18f   :  { %v594_v45 = vsel %vm593_vm8, %v592_v31, %v537_v35  ;;  %v602_v57 = vsel %vm601_vm12, %v549_v7, %v553_v38 }
 0x192   :  { %v557_v62 = vpop.permute.xlu0 %556 }
 0x193   :  { %v604_v0 = vsel %vm2595_vm13, %v602_v57, %v557_v62 }
 0x1ae   :  { %v541_v9 = vpop.permute.xlu1 %540 }
 0x1af   :  { %v596_v1 = vsel %vm595_vm9, %v594_v45, %v541_v9 }
 0x1b2   :  { %v561_v43 = vpop.permute.xlu0 %560 }
 0x1b3   :  { %v606_v13 = vsel %vm2594_vm15, %v604_v0, %v561_v43 }
 0x1c2   :  { %v545_v46 = vpop.permute.xlu1 %544  ;;  %v565_v10 = vpop.permute.xlu0 %564 }
 0x1c3   :  { %v598_v6 = vsel %vm597_vm10, %v596_v1, %v545_v46  ;;  %v608_v52 = vsel %vm607_vm0, %v606_v13, %v565_v10 }
 0x1c4   :  { %v2299_v11 = vsel %vm599_vm11, %v598_v6, %v549_v7 }
 0x1c5   :  { %v626_v23 = vand.u32 2139095040, %v2299_v11  ;;  %v623_v42 = vand.u32 2147483647, %v2299_v11 }
 0x1c7   :  { %v627_v18 = vshrl.u32 %v626_v23, 23  ;;  %v630_v22 = vand.u32 8388607, %v623_v42 }
 0x1c9   :  { %v1449_v61 = vadd.s32 4294967169, %v627_v18  ;;  %v631_v36 = vor.u32 8388608, %v630_v22 }
 0x1cb   :  { %v633_v51 = vadd.s32 1, %v1449_v61  ;;  %v671_v4 = vshll.u32 %v631_v36, 8 }
 0x1cd   :  { %vm634_vm14 = vcmp.gt.s32.totalorder %v633_v51, 0 }
 0x1ce   :  { %v635_v24 = vsel %vm634_vm14, %v633_v51, 0 }
 0x1cf   :  { %v637_v41 = vand.u32 31, %v635_v24  ;;  %v636_v20 = vshrl.u32 %v635_v24, 5 }
 0x1d1   :  { %v638_v27 = vsub.s32 32, %v637_v41  ;;  %v640_v55 = vshll.u32 %v1652_v39, %v637_v41  ;;  %v643_v47 = vshll.u32 %v1653_v44, %v637_v41  ;;  %v646_v53 = vshll.u32 %v1654_v49, %v637_v41 }
 0x1d2   :  { %v2314_v60 = vpop.permute.xlu1 %568  ;;  %v649_v56 = vshll.u32 %v1655_v40, %v637_v41  ;;  %v652_v48 = vshll.u32 %v1656_v14, %v637_v41  ;;  %vm655_vm2 = vcmp.lt.s32.totalorder %v636_v20, 1  ;;  %vm658_vm3 = vcmp.lt.s32.totalorder %v636_v20, 4 }
 0x1d3   :  { %v641_v34 = vshrl.u32 %v1653_v44, %v638_v27  ;;  %v644_v50 = vshrl.u32 %v1654_v49, %v638_v27  ;;  %v647_v63 = vshrl.u32 %v1655_v40, %v638_v27  ;;  %v650_v15 = vshrl.u32 %v1656_v14, %v638_v27 }
 0x1d4   :  { %v653_v3 = vshrl.u32 %v1657_v54, %v638_v27  ;;  %v2322_v16 = vsel %vm609_vm1, %v608_v52, %v2314_v60  ;;  %v639_v21 = vshrl.u32 %v1652_v39, %v638_v27  ;;  %vm657_vm4 = vcmp.lt.s32.totalorder %v636_v20, 3 }
 0x1d5   :  { %v642_v12 = vor.u32 %v641_v34, %v640_v55  ;;  %v645_v5 = vor.u32 %v644_v50, %v643_v47  ;;  %v648_v29 = vor.u32 %v647_v63, %v646_v53  ;;  %v651_v17 = vor.u32 %v650_v15, %v649_v56 }
 0x1d6   :  { %v654_v8 = vor.u32 %v653_v3, %v652_v48  ;;  %vm656_vm5 = vcmp.lt.s32.totalorder %v636_v20, 2  ;;  %v730_v59 = vand.u32 2139095040, %v2322_v16  ;;  %v727_v43 = vand.u32 2147483647, %v2322_v16 }
 0x1d7   :  { %v660_v19 = vsel %vm658_vm3, %v648_v29, 2102212464  ;;  %v663_v33 = vsel %vm655_vm2, %v642_v12, %v645_v5  ;;  %v667_v7 = vsel %vm655_vm2, %v645_v5, %v648_v29  ;;  %v664_v25 = vsel %vm658_vm3, %v651_v17, 920167782 }
 0x1d8   :  { %v668_v32 = vsel %vm658_vm3, %v654_v8, 1326507024  ;;  %v665_v35 = vsel %vm657_vm4, %v648_v29, %v664_v25  ;;  %v659_v2 = vsel %vm655_vm2, %v639_v21, %v642_v12  ;;  %v661_v26 = vsel %vm657_vm4, %v645_v5, %v660_v19 }
 0x1d9   :  { %v669_v58 = vsel %vm657_vm4, %v651_v17, %v668_v32  ;;  %v666_v30 = vsel %vm656_vm5, %v663_v33, %v665_v35  ;;  %v731_v38 = vshrl.u32 %v730_v59, 23  ;;  %v662_v1 = vsel %vm656_vm5, %v659_v2, %v661_v26 }
 0x1da   :  { %v670_v9 = vsel %vm656_vm5, %v667_v7, %v669_v58  ;;  %v2332_v31 = vmul.u32.u64.low %v671_v4, %v666_v30  ;;  %v2333_v45 = vmul.u32.u64.high %v671_v4, %v666_v30, %v2332_v31  ;;  %v678_v23 = vmul.u32 %v671_v4, %v662_v1 }
 0x1db   :  { %v2329_v37 = vmul.u32.u64.low %v671_v4, %v670_v9  ;;  %v2330_v28 = vmul.u32.u64.high %v671_v4, %v670_v9, %v2329_v37  ;;  %v1453_v46 = vadd.s32 4294967169, %v731_v38  ;;  %v734_v10 = vand.u32 8388607, %v727_v43 }
 0x1dc   :  { %v681_v6 = vadd.s32 1, %v2333_v45  ;;  %vm611_vm3 = vcmask 64512   ;;  %vm613_vm4 = vcmask 261120   ;;  %vm615_vm5 = vcmask 457728  }
 0x1dd   :  { %vm680_vm6 = vc.u32 %v2330_v28, %v2332_v31  ;;  %v737_v62 = vadd.s32 1, %v1453_v46  ;;  %v735_v29 = vor.u32 8388608, %v734_v10 }
 0x1de   :  { %v682_v18 = vsel %vm680_vm6, %v681_v6, %v2333_v45  ;;  %v573_v6 = vpop.permute.xlu0 %572 }
 0x1df   :  { %v683_v61 = vadd.s32 %v682_v18, %v678_v23  ;;  %vm738_vm7 = vcmp.gt.s32.totalorder %v737_v62, 0  ;;  %v775_v58 = vshll.u32 %v735_v29, 8  ;;  %v612_v10 = vsel %vm611_vm3, %v2314_v60, %v573_v6 }
 0x1e0   :  { %v739_v51 = vsel %vm738_vm7, %v737_v62, 0  ;;  %vm617_vm7 = vcmask 654336  }
 0x1e1   :  { %v684_v22 = vadd.s32 536870912, %v683_v61  ;;  %v741_v24 = vand.u32 31, %v739_v51  ;;  %v740_v0 = vshrl.u32 %v739_v51, 5 }
 0x1e3   :  { %v2341_v57 = vshrl.u32 %v684_v22, 30  ;;  %v742_v41 = vsub.s32 32, %v741_v24  ;;  %v744_v13 = vshll.u32 %v1652_v39, %v741_v24  ;;  %v747_v20 = vshll.u32 %v1653_v44, %v741_v24 }
 0x1e4   :  { %v750_v55 = vshll.u32 %v1654_v49, %v741_v24  ;;  %v753_v47 = vshll.u32 %v1655_v40, %v741_v24  ;;  %v756_v15 = vshll.u32 %v1656_v14, %v741_v24  ;;  %vm759_vm8 = vcmp.lt.s32.totalorder %v740_v0, 1 }
 0x1e5   :  { %v686_v27 = vshll.u32 %v2341_v57, 30  ;;  %v745_v36 = vshrl.u32 %v1653_v44, %v742_v41  ;;  %v748_v52 = vshrl.u32 %v1654_v49, %v742_v41  ;;  %v751_v34 = vshrl.u32 %v1655_v40, %v742_v41 }
 0x1e6   :  { %v754_v50 = vshrl.u32 %v1656_v14, %v742_v41  ;;  %v757_v53 = vshrl.u32 %v1657_v54, %v742_v41  ;;  %vm761_vm10 = vcmp.lt.s32.totalorder %v740_v0, 3  ;;  %vm762_vm14 = vcmp.lt.s32.totalorder %v740_v0, 4 }
 0x1e7   :  { %v687_v63 = vsub.s32 %v683_v61, %v686_v27  ;;  %v746_v56 = vor.u32 %v745_v36, %v744_v13  ;;  %v749_v48 = vor.u32 %v748_v52, %v747_v20  ;;  %v752_v3 = vor.u32 %v751_v34, %v750_v55 }
 0x1e8   :  { %v755_v12 = vor.u32 %v754_v50, %v753_v47  ;;  %v758_v17 = vor.u32 %v757_v53, %v756_v15  ;;  %v743_v4 = vshrl.u32 %v1652_v39, %v742_v41  ;;  %vm760_vm0 = vcmp.lt.s32.totalorder %v740_v0, 2 }
 0x1e9   :  { %v689_v5 = vsub.s32 0, %v687_v63  ;;  %v764_v19 = vsel %vm762_vm14, %v752_v3, 2102212464  ;;  %v767_v33 = vsel %vm759_vm8, %v746_v56, %v749_v48  ;;  %v771_v25 = vsel %vm759_vm8, %v749_v48, %v752_v3 }
 0x1ea   :  { %v768_v7 = vsel %vm762_vm14, %v755_v12, 920167782  ;;  %v772_v32 = vsel %vm762_vm14, %v758_v17, 1326507024  ;;  %v763_v59 = vsel %vm759_vm8, %v743_v4, %v746_v56  ;;  %v765_v2 = vsel %vm761_vm10, %v749_v48, %v764_v19  ;;  %v577_v62 = vpop.permute.xlu1 %576 }
 0x1eb   :  { %v1450_v8 = vmin.u32 %v689_v5, %v687_v63  ;;  %v769_v21 = vsel %vm761_vm10, %v752_v3, %v768_v7  ;;  %v773_v30 = vsel %vm761_vm10, %v755_v12, %v772_v32  ;;  %v766_v23 = vsel %vm760_vm0, %v763_v59, %v765_v2 }
 0x1ec   :  { %v770_v26 = vsel %vm760_vm0, %v767_v33, %v769_v21  ;;  %v774_v37 = vsel %vm760_vm0, %v771_v25, %v773_v30  ;;  %v679_v61 = vadd.s32 %v2332_v31, %v2330_v28  ;;  %v782_v41 = vmul.u32 %v775_v58, %v766_v23 }
 0x1ed   :  { %v691_v35 = vclz %v1450_v8  ;;  %v2360_v45 = vmul.u32.u64.low %v775_v58, %v770_v26  ;;  %v2361_v38 = vmul.u32.u64.high %v775_v58, %v770_v26, %v2360_v45  ;;  %v614_v31 = vsel %vm613_vm4, %v612_v10, %v577_v62 }
 0x1ee   :  { %v2364_v1 = vmul.u32.u64.low %v775_v58, %v774_v37  ;;  %v2365_v46 = vmul.u32.u64.high %v775_v58, %v774_v37, %v2364_v1  ;;  %vm619_vm8 = vcmask 850944   ;;  %vm625_vm10 = vcmp.lt.s32.totalorder %v2299_v11, 0 }
 0x1ef   :  { %v1451_v9 = vadd.s32 4294967294, %v691_v35  ;;  %v785_v24 = vadd.s32 1, %v2361_v38  ;;  %vm624_vm14 = vcmp.le.f32.partialorder %v623_v42, 0.7853982 }
 0x1f0   :  { %vm784_vm6 = vc.u32 %v2365_v46, %v2360_v45  ;;  %v783_v1 = vadd.s32 %v2360_v45, %v2365_v46 }
 0x1f1   :  { %vm1452_vm2 = vcmp.lt.s32.totalorder %v1451_v9, 0  ;;  %v786_v36 = vsel %vm784_vm6, %v785_v24, %v2361_v38 }
 0x1f2   :  { %v694_v18 = vsel %vm1452_vm2, 0, %v1451_v9  ;;  %v581_v0 = vpop.permute.xlu0 %580  ;;  %v787_v28 = vadd.s32 %v786_v36, %v782_v41 }
 0x1f3   :  { %v695_v51 = vsub.s32 32, %v694_v18  ;;  %v699_v22 = vsub.s32 4294967266, %v694_v18  ;;  %v696_v13 = vshll.u32 %v687_v63, %v694_v18  ;;  %v616_v34 = vsel %vm615_vm5, %v614_v31, %v581_v0 }
 0x1f4   :  { %v788_v50 = vadd.s32 536870912, %v787_v28  ;;  %v709_v63 = vsub.s32 4, %v2341_v57 }
 0x1f5   :  { %v697_v20 = vshrl.u32 %v679_v61, %v695_v51  ;;  %v700_v27 = vadd.s32 127, %v699_v22 }
 0x1f6   :  { %v585_v55 = vpop.permute.xlu1 %584  ;;  %v2380_v48 = vshrl.u32 %v788_v50, 30  ;;  %v710_v19 = vsel %vm625_vm10, %v709_v63, %v2341_v57 }
 0x1f7   :  { %v698_v47 = vor.u32 %v697_v20, %v696_v13  ;;  %v701_v52 = vshll.u32 %v700_v27, 23  ;;  %v618_v53 = vsel %vm617_vm7, %v616_v34, %v585_v55  ;;  %v2388_v35 = vsel %vm624_vm14, 0, %v710_v19 }
 0x1f8   :  { %v790_v29 = vshll.u32 %v2380_v48, 30  ;;  %v1034_v57 = vand.u32 3, %v2388_v35  ;;  %v813_v23 = vsub.s32 4, %v2380_v48 }
 0x1f9   :  { %v702_v60 = vor.u32 4788187, %v701_v52  ;;  %v705_v5 = vcvt.s32.f32 %v698_v47 }
 0x1fa   :  { %v791_v33 = vsub.s32 %v787_v28, %v790_v29  ;;  %vm1036_vm4 = vcmp.eq.s32.totalorder %v1034_v57, 0  ;;  %vm1035_vm6 = vcmp.lt.s32.totalorder %v1034_v57, 2  ;;  %vm1039_vm7 = vcmp.eq.s32.totalorder %v1034_v57, 2 }
 0x1fb   :  { %v589_v56 = vpop.permute.xlu0 %588  ;;  %v703_v12 = vand.u32 2147483647, %v702_v60 }
 0x1fc   :  { %v2377_v15 = vsel %vm619_vm8, %v618_v53, %v589_v56  ;;  %v793_v21 = vsub.s32 0, %v791_v33  ;;  %vm715_vm8 = vweird.f32 %v2299_v11 }
 0x1fd   :  { %v834_v3 = vand.u32 2139095040, %v2377_v15  ;;  %v706_v8 = vmul.f32 %v705_v5, %v703_v12  ;;  %v831_v2 = vand.u32 2147483647, %v2377_v15 }
 0x1fe   :  { %v1454_v59 = vmin.u32 %v793_v21, %v791_v33 }
 0x1ff   :  { %v835_v17 = vshrl.u32 %v834_v3, 23  ;;  %v707_v4 = vxor.u32 2147483648, %v706_v8  ;;  %v838_v42 = vand.u32 8388607, %v831_v2 }
 0x200   :  { %v795_v26 = vclz %v1454_v59 }
 0x201   :  { %v1457_v7 = vadd.s32 4294967169, %v835_v17  ;;  %v708_v32 = vsel %vm625_vm10, %v707_v4, %v706_v8  ;;  %v839_v61 = vor.u32 8388608, %v838_v42  ;;  %vm729_vm10 = vcmp.lt.s32.totalorder %v2322_v16, 0 }
 0x202   :  { %v711_v58 = vsel %vm624_vm14, %v2299_v11, %v708_v32  ;;  %v1455_v9 = vadd.s32 4294967294, %v795_v26 }
 0x203   :  { %v841_v25 = vadd.s32 1, %v1457_v7  ;;  %1530 = vcosq.f32 %v711_v58  ;;  %v879_v12 = vshll.u32 %v839_v61, 8  ;;  %v716_v61 = vadd.s32 3, %v2388_v35 }
 0x204   :  { %1532 = vsinq.f32 %v711_v58  ;;  %vm1456_vm2 = vcmp.lt.s32.totalorder %v1455_v9, 0 }
 0x205   :  { %vm842_vm0 = vcmp.gt.s32.totalorder %v841_v25, 0  ;;  %v798_v6 = vsel %vm1456_vm2, 0, %v1455_v9 }
 0x206   :  { %v843_v30 = vsel %vm842_vm0, %v841_v25, 0  ;;  %v799_v62 = vsub.s32 32, %v798_v6  ;;  %v803_v18 = vsub.s32 4294967266, %v798_v6  ;;  %v800_v22 = vshll.u32 %v791_v33, %v798_v6 }
 0x207   :  { %v845_v37 = vand.u32 31, %v843_v30  ;;  %v844_v51 = vshrl.u32 %v843_v30, 5  ;;  %v814_v6 = vsel %vm729_vm10, %v813_v23, %v2380_v48 }
 0x208   :  { %v801_v0 = vshrl.u32 %v783_v1, %v799_v62  ;;  %v804_v45 = vadd.s32 127, %v803_v18 }
 0x209   :  { %v846_v38 = vsub.s32 32, %v845_v37  ;;  %v848_v27 = vshll.u32 %v1652_v39, %v845_v37  ;;  %v851_v36 = vshll.u32 %v1653_v44, %v845_v37  ;;  %v854_v55 = vshll.u32 %v1654_v49, %v845_v37 }
 0x20a   :  { %v857_v28 = vshll.u32 %v1655_v40, %v845_v37  ;;  %v802_v52 = vor.u32 %v801_v0, %v800_v22  ;;  %v805_v34 = vshll.u32 %v804_v45, 23  ;;  %v860_v50 = vshll.u32 %v1656_v14, %v845_v37 }
 0x20b   :  { %v849_v24 = vshrl.u32 %v1653_v44, %v846_v38  ;;  %v852_v41 = vshrl.u32 %v1654_v49, %v846_v38  ;;  %v855_v10 = vshrl.u32 %v1655_v40, %v846_v38  ;;  %v858_v46 = vshrl.u32 %v1656_v14, %v846_v38 }
 0x20c   :  { %v861_v13 = vshrl.u32 %v1657_v54, %v846_v38  ;;  %v806_v44 = vor.u32 4788187, %v805_v34  ;;  %v847_v14 = vshrl.u32 %v1652_v39, %v846_v38  ;;  %vm863_vm14 = vcmp.lt.s32.totalorder %v844_v51, 1 }
 0x20d   :  { %v2404_v20 = vpop.eup %1530  ;;  %v850_v53 = vor.u32 %v849_v24, %v848_v27  ;;  %v853_v56 = vor.u32 %v852_v41, %v851_v36  ;;  %v856_v60 = vor.u32 %v855_v10, %v854_v55  ;;  %v859_v40 = vor.u32 %v858_v46, %v857_v28 }
 0x20e   :  { %v2410_v31 = vpop.eup %1532  ;;  %v723_v47 = vxor.u32 2147483648, %v2404_v20  ;;  %v862_v63 = vor.u32 %v861_v13, %v860_v50  ;;  %v807_v5 = vand.u32 2147483647, %v806_v44  ;;  %v809_v29 = vcvt.s32.f32 %v802_v52 }
 0x20f   :  { %v720_v54 = vxor.u32 2147483648, %v2410_v31  ;;  %vm866_vm0 = vcmp.lt.s32.totalorder %v844_v51, 4  ;;  %vm865_vm2 = vcmp.lt.s32.totalorder %v844_v51, 3  ;;  %v871_v33 = vsel %vm863_vm14, %v850_v53, %v853_v56 }
 0x210   :  { %v1041_v49 = vsel %vm1039_vm7, %v723_v47, %v2410_v31  ;;  %v868_v19 = vsel %vm866_vm0, %v856_v60, 2102212464  ;;  %v810_v7 = vmul.f32 %v809_v29, %v807_v5  ;;  %v872_v4 = vsel %vm866_vm0, %v859_v40, 920167782 }
 0x211   :  { %v1038_v3 = vsel %vm1036_vm4, %v2404_v20, %v720_v54  ;;  %v875_v21 = vsel %vm863_vm14, %v853_v56, %v856_v60  ;;  %v876_v25 = vsel %vm866_vm0, %v862_v63, 1326507024  ;;  %vm864_vm4 = vcmp.lt.s32.totalorder %v844_v51, 2 }
 0x212   :  { %v1042_v17 = vsel %vm1035_vm6, %v1038_v3, %v1041_v49  ;;  %v867_v39 = vsel %vm863_vm14, %v847_v14, %v850_v53  ;;  %v873_v32 = vsel %vm865_vm2, %v856_v60, %v872_v4  ;;  %v877_v58 = vsel %vm865_vm2, %v859_v40, %v876_v25 }
 0x213   :  { %v2426_v8 = vsel %vm715_vm8, nan, %v1042_v17  ;;  %v811_v59 = vxor.u32 2147483648, %v810_v7  ;;  %v869_v26 = vsel %vm865_vm2, %v853_v56, %v868_v19  ;;  %v874_v57 = vsel %vm864_vm4, %v871_v33, %v873_v32 }
 0x214   :  { %v878_v30 = vsel %vm864_vm4, %v875_v21, %v877_v58  ;;  %v2431_v37 = vmul.u32.u64.low %v879_v12, %v874_v57  ;;  %v2432_v38 = vmul.u32.u64.high %v879_v12, %v874_v57, %v2431_v37  ;;  %vm728_vm6 = vcmp.le.f32.partialorder %v727_v43, 0.7853982 }
 0x215   :  { %v2428_v9 = vmul.u32.u64.low %v879_v12, %v878_v30  ;;  %v2429_v42 = vmul.u32.u64.high %v879_v12, %v878_v30, %v2428_v9  ;;  %v812_v1 = vsel %vm729_vm10, %v811_v59, %v810_v7  ;;  %v870_v18 = vsel %vm864_vm4, %v867_v39, %v869_v26 }
 0x216   :  { %v815_v62 = vsel %vm728_vm6, %v2322_v16, %v812_v1  ;;  %v816_v51 = vsel %vm728_vm6, 0, %v814_v6  ;;  %v889_v43 = vadd.s32 1, %v2432_v38  ;;  %v886_v22 = vmul.u32 %v879_v12, %v870_v18 }
 0x217   :  { %1534 = vcosq.f32 %v815_v62  ;;  %vm888_vm7 = vc.u32 %v2429_v42, %v2431_v37  ;;  %v820_v41 = vadd.s32 3, %v816_v51  ;;  %v717_v0 = vand.u32 3, %v716_v61 }
 0x218   :  { %1536 = vsinq.f32 %v815_v62  ;;  %v890_v24 = vsel %vm888_vm7, %v889_v43, %v2432_v38  ;;  %v1137_v23 = vand.u32 3, %v816_v51  ;;  %v887_v17 = vadd.s32 %v2431_v37, %v2429_v42 }
 0x219   :  { %v891_v10 = vadd.s32 %v890_v24, %v886_v22  ;;  %v821_v45 = vand.u32 3, %v820_v41  ;;  %vm719_vm10 = vcmp.eq.s32.totalorder %v717_v0, 0  ;;  %vm722_vm14 = vcmp.eq.s32.totalorder %v717_v0, 2  ;;  %v622_v24 = vld [vmem:[#allocation5 + $0x8] sm:$0xf] }
 0x21a   :  { %v721_v13 = vsel %vm719_vm10, %v2404_v20, %v720_v54  ;;  %v724_v27 = vsel %vm722_vm14, %v723_v47, %v2410_v31  ;;  %vm718_vm0 = vcmp.lt.s32.totalorder %v717_v0, 2  ;;  %vm1138_vm2 = vcmp.lt.s32.totalorder %v1137_v23, 2  ;;  %v2456_v47 = vld [vmem:[#allocation5] sm:$0xff] }
 0x21b   :  { %v892_v48 = vadd.s32 536870912, %v891_v10  ;;  %vm1139_vm4 = vcmp.eq.s32.totalorder %v1137_v23, 0  ;;  %vm826_vm6 = vcmp.eq.s32.totalorder %v821_v45, 2  ;;  %vm1142_vm7 = vcmp.eq.s32.totalorder %v1137_v23, 2 }
 0x21c   :  { %v725_v50 = vsel %vm718_vm0, %v721_v13, %v724_v27  ;;  %vm823_vm15 = vcmp.eq.s32.totalorder %v821_v45, 0  ;;  %vm822_vm13 = vcmp.lt.s32.totalorder %v821_v45, 2  ;;  %vm819_vm10 = vweird.f32 %v2322_v16 }
 0x21d   :  { %v893_v46 = vshrl.u32 %v892_v48, 30  ;;  %v726_v49 = vsel %vm715_vm8, nan, %v725_v50  ;;  %vm833_vm8 = vcmp.lt.s32.totalorder %v2377_v15, 0  ;;  %vm832_vm14 = vcmp.le.f32.partialorder %v831_v2, 0.7853982 }
 0x21f   :  { %v894_v36 = vshll.u32 %v893_v46, 30  ;;  %v917_v57 = vsub.s32 4, %v893_v46 }
 0x221   :  { %v1535_v35 = vpop.eup %1534  ;;  %v895_v34 = vsub.s32 %v891_v10, %v894_v36  ;;  %v918_v42 = vsel %vm833_vm8, %v917_v57, %v893_v46 }
 0x222   :  { %v1537_v55 = vpop.eup %1536  ;;  %v827_v28 = vxor.u32 2147483648, %v1535_v35  ;;  %v920_v38 = vsel %vm832_vm14, 0, %v918_v42 }
 0x223   :  { %v824_v52 = vxor.u32 2147483648, %v1537_v55  ;;  %v897_v44 = vsub.s32 0, %v895_v34  ;;  %v924_v1 = vadd.s32 3, %v920_v38  ;;  %v1240_v62 = vand.u32 3, %v920_v38 }
 0x224   :  { %v828_v53 = vsel %vm826_vm6, %v827_v28, %v1537_v55  ;;  %v1144_v56 = vsel %vm1142_vm7, %v827_v28, %v1537_v55 }
 0x225   :  { %v825_v54 = vsel %vm823_vm15, %v1535_v35, %v824_v52  ;;  %v1141_v60 = vsel %vm1139_vm4, %v1535_v35, %v824_v52  ;;  %v1458_v3 = vmin.u32 %v897_v44, %v895_v34  ;;  %vm1256_vm15 = vcmask 191488  }
 0x226   :  { %v829_v20 = vsel %vm822_vm13, %v825_v54, %v828_v53  ;;  %v1145_v31 = vsel %vm1138_vm2, %v1141_v60, %v1144_v56  ;;  %v925_v6 = vand.u32 3, %v924_v1  ;;  %vm1245_vm2 = vcmp.eq.s32.totalorder %v1240_v62, 2 }
 0x227   :  { %v830_v40 = vsel %vm819_vm10, nan, %v829_v20  ;;  %v2460_v63 = vsel %vm819_vm10, nan, %v1145_v31  ;;  %v899_v5 = vclz %v1458_v3  ;;  %vm1242_vm6 = vcmp.eq.s32.totalorder %v1240_v62, 0 }
 0x228   :  { %v937_v14 = vcombine.low %v726_v49, %v830_v40  ;;  %v1252_v12 = vcombine.low %v2426_v8, %v2460_v63  ;;  %vm930_vm0 = vcmp.eq.s32.totalorder %v925_v6, 2  ;;  %vm927_vm4 = vcmp.eq.s32.totalorder %v925_v6, 0 }
 0x229   :  { %v1459_v29 = vadd.s32 4294967294, %v899_v5  ;;  %vm926_vm7 = vcmp.lt.s32.totalorder %v925_v6, 2  ;;  %vm1241_vm10 = vcmp.lt.s32.totalorder %v1240_v62, 2 }
 0x22a   :  { %v2465_v16 = vmul.f32 %v937_v14, %v2456_v47 }
 0x22b   :  { %vm1460_vm13 = vcmp.lt.s32.totalorder %v1459_v29, 0 }
 0x22c   :  { %1257 = vst.msk [vmem:[#allocation7] sm:$0xf] %vm1256_vm15, %v2465_v16  ;;  %v902_v11 = vsel %vm1460_vm13, 0, %v1459_v29  ;;  %vm923_vm13 = vweird.f32 %v2377_v15 }
 0x22d   :  { %v903_v19 = vsub.s32 32, %v902_v11  ;;  %v907_v33 = vsub.s32 4294967266, %v902_v11  ;;  %v904_v7 = vshll.u32 %v895_v34, %v902_v11 }
 0x22f   :  { %v905_v4 = vshrl.u32 %v887_v17, %v903_v19  ;;  %v908_v21 = vadd.s32 127, %v907_v33 }
 0x231   :  { %v906_v25 = vor.u32 %v905_v4, %v904_v7  ;;  %v909_v39 = vshll.u32 %v908_v21, 23 }
 0x233   :  { %v910_v32 = vor.u32 4788187, %v909_v39  ;;  %v913_v59 = vcvt.s32.f32 %v906_v25 }
 0x235   :  { %v911_v58 = vand.u32 2147483647, %v910_v32 }
 0x237   :  { %v914_v26 = vmul.f32 %v913_v59, %v911_v58 }
 0x239   :  { %v915_v30 = vxor.u32 2147483648, %v914_v26 }
 0x23b   :  { %v916_v9 = vsel %vm833_vm8, %v915_v30, %v914_v26  ;;  %vm1262_vm8 = vcmask 388288  }
 0x23c   :  { %v919_v37 = vsel %vm832_vm14, %v2377_v15, %v916_v9  ;;  %v1254_v15 = vmul.f32 %v1252_v12, %v2456_v47  ;;  %vm1268_vm14 = vcmask 585088  }
 0x23d   :  { %1538 = vcosq.f32 %v919_v37 }
 0x23e   :  { %1540 = vsinq.f32 %v919_v37 }
 0x247   :  { %v1539_v18 = vpop.eup %1538 }
 0x248   :  { %v1541_v61 = vpop.eup %1540  ;;  %v931_v51 = vxor.u32 2147483648, %v1539_v18 }
 0x249   :  { %v928_v43 = vxor.u32 2147483648, %v1541_v61 }
 0x24a   :  { %v932_v22 = vsel %vm930_vm0, %v931_v51, %v1541_v61  ;;  %v1247_v2 = vsel %vm1245_vm2, %v931_v51, %v1541_v61  ;;  %vm1273_vm0 = vcmask 781888   ;;  %vm1285_vm2 = vcmask 1044416  }
 0x24b   :  { %v929_v41 = vsel %vm927_vm4, %v1539_v18, %v928_v43  ;;  %v1244_v10 = vsel %vm1242_vm6, %v1539_v18, %v928_v43  ;;  %vm1286_vm4 = vcmask 130052   ;;  %vm1278_vm6 = vcmask 978688  }
 0x24c   :  { %v933_v0 = vsel %vm926_vm7, %v929_v41, %v932_v22  ;;  %v1248_v48 = vsel %vm1241_vm10, %v1244_v10, %v1247_v2  ;;  %vm2536_vm7 = vmor %vm1286_vm4, %vm1285_vm2  ;;  %vm1292_vm10 = vcmask 322688   ;;  %vm2614_vm2 = vcmask 326656  }
 0x24d   :  { %v934_v23 = vsel %vm923_vm13, nan, %v933_v0  ;;  %v1249_v45 = vsel %vm923_vm13, nan, %v1248_v48  ;;  %vm1297_vm13 = vcmask 519488   ;;  %vm1351_vm4 = vcmask 1044288  }
 0x24e   :  { %v940_v46 = vmul.f32 %v934_v23, %v622_v24  ;;  %v2476_v35 = vmul.f32 %v1249_v45, %v622_v24 }
 0x250   :  { %1385 = vrot.lane.b32.xlu0 %v2476_v35, %s1648_s1  ;;  %1394 = vrot.lane.b32.xlu1 %v940_v46, %s1648_s1 }
 0x254   :  { %1410 = vrot.lane.b32.xlu1 %v940_v46, %s1650_s7  ;;  %1376 = vrot.lane.b32.xlu0 %v940_v46, %s1647_s5 }
 0x258   :  { %1406 = vrot.lane.b32.xlu1 %v2476_v35, %s1650_s7  ;;  %1398 = vrot.lane.b32.xlu0 %v2476_v35, %s1649_s6 }
 0x25c   :  { %1353 = vrot.lane.b32.xlu1 %v2465_v16, %s1644_s0  ;;  %1402 = vrot.lane.b32.xlu0 %v940_v46, %s1649_s6 }
 0x260   :  { %1363 = vrot.lane.b32.xlu1 %v2465_v16, %s1646_s4  ;;  %1416 = vrot.lane.b32.xlu0 %v2476_v35, %s1651_s8 }
 0x264   :  { %1368 = vrot.lane.b32.xlu1 %v1254_v15, %s1647_s5  ;;  %1420 = vrot.lane.b32.xlu0 %v940_v46, %s1651_s8 }
 0x268   :  { %1383 = vrot.lane.b32.xlu1 %v1254_v15, %s1648_s1  ;;  %1358 = vrot.lane.b32.xlu0 %v1254_v15, %s1646_s4 }
 0x26c   :  { %1265 = vrot.lane.b32.xlu1 %v2465_v16, %s1639_s26  ;;  %1259 = vrot.lane.b32.xlu0 %v1254_v15, %s1639_s26 }
 0x270   :  { %1270 = vrot.lane.b32.xlu1 %v1254_v15, %s1640_s27  ;;  %1374 = vrot.lane.b32.xlu0 %v2465_v16, %s1647_s5 }
 0x274   :  { %1275 = vrot.lane.b32.xlu1 %v2465_v16, %s1640_s27  ;;  %1280 = vrot.lane.b32.xlu0 %v1254_v15, %s1643_s30 }
 0x278   :  { %1309 = vrot.lane.b32.xlu1 %v2465_v16, %s1638_s25  ;;  %1289 = vrot.lane.b32.xlu0 %v2465_v16, %s1643_s30 }
 0x27c   :  { %1318 = vrot.lane.b32.xlu1 %v1254_v15, %s1641_s28  ;;  %1294 = vrot.lane.b32.xlu0 %v1254_v15, %s1645_s3 }
 0x280   :  { %1304 = vrot.lane.b32.xlu1 %v1254_v15, %s1638_s25  ;;  %1299 = vrot.lane.b32.xlu0 %v2465_v16, %s1645_s3 }
 0x284   :  { %1339 = vrot.lane.b32.xlu1 %v2465_v16, %s1642_s29  ;;  %1325 = vrot.lane.b32.xlu0 %v2465_v16, %s1641_s28 }
 0x288   :  { %1346 = vrot.lane.b32.xlu1 %v1254_v15, %s1644_s0  ;;  %1332 = vrot.lane.b32.xlu0 %v1254_v15, %s1642_s29 }
 0x28c   :  { %1424 = vrot.lane.b32.xlu1 %v2476_v35, %s1630_s17  ;;  %1428 = vrot.lane.b32.xlu0 %v940_v46, %s1630_s17 }
 0x2c2   :  { %v1386_v8 = vpop.permute.xlu0 %1385  ;;  %v1395_v13 = vpop.permute.xlu1 %1394 }
 0x2c3   :  { %v1388_v14 = vrot.slane %v1386_v8, 4 }
 0x2c6   :  { %v2529_v27 = vpop.permute.xlu1 %1410  ;;  %v1377_v36 = vpop.permute.xlu0 %1376 }
 0x2c7   :  { %v1412_v4 = vrot.slane %v2529_v27, 4 }
 0x2c9   :  { %v1413_v59 = vsel %vm615_vm5, %v1412_v4, %v2529_v27  ;;  %vm1344_vm5 = vcmask 847488  }
 0x2ca   :  { %v2531_v55 = vpop.permute.xlu1 %1406  ;;  %v1399_v28 = vpop.permute.xlu0 %1398 }
 0x2ce   :  { %v1354_v52 = vpop.permute.xlu1 %1353  ;;  %v1403_v34 = vpop.permute.xlu0 %1402 }
 0x2cf   :  { %v1355_v50 = vrot.slane %v1354_v52, 4 }
 0x2d1   :  { %1357 = vst.msk [vmem:[#allocation7 + $0xc] sm:$0xf] %vm1256_vm15, %v1355_v50  ;;  %vm1389_vm15 = vcmask 1043456  }
 0x2d2   :  { %v1364_v53 = vpop.permute.xlu1 %1363  ;;  %v1417_v56 = vpop.permute.xlu0 %1416 }
 0x2d3   :  { %v1365_v47 = vrot.slane %v1364_v53, 4 }
 0x2d6   :  { %v1369_v54 = vpop.permute.xlu1 %1368  ;;  %v1421_v60 = vpop.permute.xlu0 %1420 }
 0x2d7   :  { %v1370_v49 = vrot.slane %v1369_v54, 4 }
 0x2da   :  { %v1384_v44 = vpop.permute.xlu1 %1383  ;;  %v1359_v20 = vpop.permute.xlu0 %1358 }
 0x2db   :  { %v1360_v31 = vrot.slane %v1359_v20, 4  ;;  %v1387_v3 = vrot.slane %v1384_v44, 4 }
 0x2dd   :  { %1362 = vst.msk [vmem:[#allocation7 + $0xc] sm:$0xf] %vm1262_vm8, %v1360_v31  ;;  %v1390_v16 = vsel %vm1389_vm15, %v1387_v3, %v1388_v14  ;;  %vm1323_vm15 = vcmask 257088  }
 0x2de   :  { %v1266_v40 = vpop.permute.xlu1 %1265  ;;  %v1260_v63 = vpop.permute.xlu0 %1259  ;;  %1367 = vst.msk [vmem:[#allocation7 + $0xc] sm:$0xf] %vm1268_vm14, %v1365_v47  ;;  %v1391_v19 = vsel %vm611_vm3, %v1384_v44, %v1390_v16 }
 0x2df   :  { %1263 = vst.msk [vmem:[#allocation7] sm:$0xf] %vm1262_vm8, %v1260_v63  ;;  %vm1314_vm8 = vcmask 1044352  }
 0x2e0   :  { %1372 = vst.msk [vmem:[#allocation7 + $0xc] sm:$0xf] %vm1273_vm0, %v1370_v49 }
 0x2e1   :  { %1269 = vst.msk [vmem:[#allocation7] sm:$0xf] %vm1268_vm14, %v1266_v40  ;;  %vm1315_vm14 = vcmask 64516  }
 0x2e2   :  { %v1271_v12 = vpop.permute.xlu1 %1270  ;;  %v1375_v5 = vpop.permute.xlu0 %1374  ;;  %vm2548_vm3 = vmor %vm1315_vm14, %vm1314_vm8 }
 0x2e3   :  { %1274 = vst.msk [vmem:[#allocation7] sm:$0xf] %vm1273_vm0, %v1271_v12  ;;  %v1378_v29 = vrot.slane %v1375_v5, 4  ;;  %vm1302_vm0 = vcmask 716288  }
 0x2e5   :  { %v1379_v17 = vsel %vm609_vm1, %v1378_v29, %v1377_v36  ;;  %vm1307_vm1 = vcmask 913088  }
 0x2e6   :  { %v1276_v33 = vpop.permute.xlu1 %1275  ;;  %1381 = vst.msk [vmem:[#allocation7 + $0xc] sm:$0xf] %vm1278_vm6, %v1379_v17  ;;  %v1281_v7 = vpop.permute.xlu0 %1280 }
 0x2e7   :  { %1279 = vst.msk [vmem:[#allocation7] sm:$0xf] %vm1278_vm6, %v1276_v33  ;;  %v1282_v21 = vrot.slane %v1281_v7, 4  ;;  %vm2615_vm6 = vmmov %vm2614_vm2 }
 0x2e8   :  { %1393 = vst.msk [vmem:[#allocation7 + $0xc] sm:$0xff] %vm2536_vm7, %v1391_v19 }
 0x2e9   :  { %1397 = vst.msk [vmem:[#allocation7 + $0x10] sm:$0xf] %vm1292_vm10, %v1395_v13  ;;  %v1283_v25 = vsel %vm595_vm9, %v1282_v21, %v1281_v7  ;;  %vm1330_vm9 = vcmask 453888  }
 0x2ea   :  { %1401 = vst.msk [vmem:[#allocation7 + $0x10] sm:$0xf] %vm1297_vm13, %v1399_v28  ;;  %v1310_v32 = vpop.permute.xlu1 %1309  ;;  %v1290_v58 = vpop.permute.xlu0 %1289 }
 0x2eb   :  { %1288 = vst.msk [vmem:[#allocation7] sm:$0xff] %vm2536_vm7, %v1283_v25  ;;  %v1311_v30 = vrot.slane %v1310_v32, 4 }
 0x2ec   :  { %1405 = vst.msk [vmem:[#allocation7 + $0x10] sm:$0xf] %vm1302_vm0, %v1403_v34 }
 0x2ed   :  { %1293 = vst.msk [vmem:[#allocation7 + $0x4] sm:$0xf] %vm1292_vm10, %v1290_v58  ;;  %v1312_v38 = vsel %vm599_vm11, %v1310_v32, %v1311_v30  ;;  %vm1337_vm11 = vcmask 650688  }
 0x2ee   :  { %1409 = vst.msk [vmem:[#allocation7 + $0x10] sm:$0xf] %vm1307_vm1, %v2531_v55  ;;  %v1319_v26 = vpop.permute.xlu1 %1318  ;;  %v1295_v57 = vpop.permute.xlu0 %1294 }
 0x2ef   :  { %1415 = vst.msk [vmem:[#allocation7 + $0x10] sm:$0xff] %vm2548_vm3, %v1413_v59  ;;  %v1320_v9 = vrot.slane %v1319_v26, 4 }
 0x2f0   :  { %1419 = vst.msk [vmem:[#allocation7 + $0x14] sm:$0xf] %vm1323_vm15, %v1417_v56 }
 0x2f1   :  { %1423 = vst.msk [vmem:[#allocation7 + $0x14] sm:$0xf] %vm1330_vm9, %v1421_v60  ;;  %v1321_v1 = vsel %vm601_vm12, %v1319_v26, %v1320_v9 }
 0x2f2   :  { %1298 = vst.msk [vmem:[#allocation7 + $0x4] sm:$0xf] %vm1297_vm13, %v1295_v57  ;;  %v1305_v42 = vpop.permute.xlu1 %1304  ;;  %v1300_v37 = vpop.permute.xlu0 %1299 }
 0x2f3   :  { %1303 = vst.msk [vmem:[#allocation7 + $0x4] sm:$0xf] %vm1302_vm0, %v1300_v37 }
 0x2f4   :  { %1308 = vst.msk [vmem:[#allocation7 + $0x4] sm:$0xf] %vm1307_vm1, %v1305_v42 }
 0x2f5   :  { %1317 = vst.msk [vmem:[#allocation7 + $0x4] sm:$0xff] %vm2548_vm3, %v1312_v38 }
 0x2f6   :  { %v1340_v6 = vpop.permute.xlu1 %1339  ;;  %1324 = vst.msk [vmem:[#allocation7 + $0x8] sm:$0xf] %vm1323_vm15, %v1321_v1  ;;  %v1326_v62 = vpop.permute.xlu0 %1325 }
 0x2f7   :  { %v1327_v18 = vrot.slane %v1326_v62, 4  ;;  %v1341_v51 = vrot.slane %v1340_v6, 4 }
 0x2f9   :  { %v1328_v61 = vsel %vm601_vm12, %v1326_v62, %v1327_v18  ;;  %v1342_v10 = vsel %vm2615_vm6, %v1340_v6, %v1341_v51  ;;  %vm2616_vm12 = vcmask 523264  }
 0x2fa   :  { %1331 = vst.msk [vmem:[#allocation7 + $0x8] sm:$0xf] %vm1330_vm9, %v1328_v61  ;;  %v1347_v43 = vpop.permute.xlu1 %1346  ;;  %v1333_v22 = vpop.permute.xlu0 %1332 }
 0x2fb   :  { %v1348_v2 = vrot.slane %v1347_v43, 4  ;;  %v1334_v24 = vrot.slane %v1333_v22, 4 }
 0x2fd   :  { %v1335_v41 = vsel %vm2614_vm2, %v1333_v22, %v1334_v24  ;;  %v1349_v23 = vsel %vm2616_vm12, %v1347_v43, %v1348_v2 }
 0x2fe   :  { %1338 = vst.msk [vmem:[#allocation7 + $0x8] sm:$0xf] %vm1337_vm11, %v1335_v41  ;;  %v1425_v0 = vpop.permute.xlu1 %1424  ;;  %v1429_v48 = vpop.permute.xlu0 %1428 }
 0x2ff   :  { %1427 = vst.msk [vmem:[#allocation7 + $0x14] sm:$0xf] %vm1337_vm11, %v1425_v0 }
 0x300   :  { %1345 = vst.msk [vmem:[#allocation7 + $0x8] sm:$0xf] %vm1344_vm5, %v1342_v10  ;;  %1431 = vst.msk [vmem:[#allocation7 + $0x14] sm:$0xf] %vm1344_vm5, %v1429_v48 }
 0x301   :  { %1352 = vst.msk [vmem:[#allocation7 + $0x8] sm:$0xf] %vm1351_vm4, %v1349_v23  ;;  %1432 = vst.msk [vmem:[#allocation7 + $0x14] sm:$0xf] %vm1351_vm4, %v2476_v35 }
 0x302   :  { %1597 = shalt.err (!%p1594_p6)
}
 0x303   :  { %s1598_s14 = scalar_lea.hbm %s2592_s2, 384 }
 0x304   :  { %p1599_p7 = scmp.ne.s32.totalorder %s2592_s2, %s1598_s14  ;;  %p1602_p8 = scmp.lt.u32.totalorder %s1598_s14, %s2592_s2 }
 0x306   :  { %p1604_p9 = pnand %p1602_p8, %p1599_p7 }
 0x308   :  { %1607 = shalt.err (!%p1604_p9)
}
 0x309   :  { %1442 = dma.vmem_to_hbm [thread:$0]  %s1440_s10, 384, %s2592_s2, [#allocation4]  }
 0x30a   :  { %1612 = dma.done.wait [#allocation4], 384  }
 0x30b   :  { %1613 = vsyncadd [#allocation4], 4294966912 }
 0x30c   :  { %1446 = vsyncpa [#allocation3], 1 }
 0x30d   :  { %1447 = vsyncpa [#allocation6], 1 }
 0x30e   :  { %1448 = vsyncpa [#allocation4], 1 }

</bundles_post_ra>
